<compile_context>
chip_gen: v7x
topology: tpu7x:2x2x1
jax: 0.10.0
libtpu: 0.0.40
codegen_flags: <defaults>
</compile_context>

<pallas_src>
import jax
import jax.numpy as jnp
from jax.experimental import pallas as pl
from jax.experimental.pallas import tpu as pltpu

L = 1000            # fc_size[0]
LP = 1024           # L padded to a multiple of 128 lanes
D = 256             # fc_size[1]
N_CLASSES = 3
NEG_INF = -1e30     # plain Python float (a jnp scalar would be captured as a
                    # kernel constant and break pallas tracing)


def _round_up(x, m):
    return (x + m - 1) // m * m


def _cdiv(a, b):
    return -(-a // b)


def _chip_config():
    """Per-generation (tile_n, num_splits, vmem_limit_bytes).

    v5e : firmly MXU-bound -> small tile, single core.
    v6e : mildly HBM-bound -> big streaming tile (fits now that the f32 x temp
          is gone), raised VMEM limit.
    v7x : 64 MiB VMEM, 2 TensorCores -> modest tile, shard N across cores.
    """
    kind = ""
    try:
        kind = jax.devices()[0].device_kind.lower()
    except Exception:
        pass
    if "v5" in kind:
        tn, splits, vlim = 512, 1, 32 * 1024 * 1024
    elif "v6" in kind:
        tn, splits, vlim = 2048, 1, 64 * 1024 * 1024
    elif "v7" in kind:
        tn, splits, vlim = 1024, 2, 48 * 1024 * 1024
    else:
        tn, splits, vlim = 1024, 1, 48 * 1024 * 1024
    try:  # respect the reported VMEM capacity if the API is available
        cap = getattr(pltpu.get_tpu_info(), "vmem_capacity_bytes", None)
        if cap:
            vlim = min(vlim, int(cap) * 3 // 4)
    except Exception:
        pass
    return tn, splits, vlim


def _make_abmil_kernel(n_total, n_pad, tile_n, tiles_per_split):
    rows_per_split = tiles_per_split * tile_n

    def kernel(x_ref, wab_ref, bab_ref, wc_ref, bc_ref,
               scores_ref, m_out_ref, l_out_ref, acc_out_ref,
               m_sc, l_sc, acc_sc):
        c = pl.program_id(0)        # split index (maps to a TensorCore on v7x)
        i = pl.program_id(1)        # N-tile index within the split

        @pl.when(i == 0)
        def _init():
            m_sc[...] = jnp.full(m_sc.shape, NEG_INF, dtype=m_sc.dtype)
            l_sc[...] = jnp.zeros(l_sc.shape, dtype=l_sc.dtype)
            acc_sc[...] = jnp.zeros(acc_sc.shape, dtype=acc_sc.dtype)

        x = x_ref[...]                                              # (tn, LP) bf16

        # Fused gated attention head: one 512-wide bf16 MXU matmul, f32 accum.
        h = jnp.dot(x, wab_ref[...],
                    preferred_element_type=jnp.float32) + bab_ref[...]   # (tn, 2D)
        gated = (jnp.tanh(h[:, :D]) * jax.nn.sigmoid(h[:, D:])
                 ).astype(jnp.bfloat16)                                  # (tn, D)

        # attention_c as a lane-major trans_b matmul: scores come out as a
        # (1, tn) row, so the scores store is lane-dense and the pooled
        # reduction below is a plain MXU matmul.
        scores = jax.lax.dot_general(
            wc_ref[...], gated,
            dimension_numbers=(((1,), (1,)), ((), ())),
            preferred_element_type=jnp.float32) + bc_ref[...]            # (1, tn)

        if n_total < n_pad:  # mask zero-padded instances out of the softmax
            col = (c * rows_per_split + i * tile_n
                   + jax.lax.broadcasted_iota(jnp.int32, scores.shape, 1))
            scores = jnp.where(col < n_total, scores, NEG_INF)

        scores_ref[...] = scores    # raw (unnormalized) scores; fixed in wrapper

        # Online softmax update (all f32 state in VMEM scratch).
        m_prev = m_sc[...]                                               # (1, 1)
        m_new = jnp.maximum(m_prev, jnp.max(scores, axis=-1, keepdims=True))
        alpha = jnp.exp(m_prev - m_new)                                  # (1, 1)
        e = jnp.exp(scores - m_new)                                      # (1, tn)
        l_sc[...] = alpha * l_sc[...] + jnp.sum(e, axis=-1, keepdims=True)
        # Pooled bag update on the MXU ((1,tn)x(tn,LP)); avoids materializing
        # an f32 copy of x and several extra VPU passes over the tile.
        pooled = jnp.dot(e.astype(jnp.bfloat16), x,
                         preferred_element_type=jnp.float32)             # (1, LP)
        acc_sc[...] = alpha * acc_sc[...] + pooled
        m_sc[...] = m_new

        # Emit this split's (m, l, acc) partial state on its last tile; the
        # logsumexp merge + classifier run in the wrapper (O(LP), tiny).
        @pl.when(i == pl.num_programs(1) - 1)
        def _finalize():
            m_out_ref[...] = jnp.broadcast_to(m_sc[...], m_out_ref.shape)
            l_out_ref[...] = jnp.broadcast_to(l_sc[...], l_out_ref.shape)
            acc_out_ref[...] = acc_sc[...]

    return kernel


def abmil_forward(wsi_h, params, tile_n=None, num_splits=None):
    # mirrors wsi_h.squeeze(0).squeeze(0).squeeze(0)
    x = wsi_h.reshape(wsi_h.shape[-2], wsi_h.shape[-1])              # (N, L) f32
    n = x.shape[0]

    cfg_tn, cfg_splits, vmem_limit = _chip_config()
    tn = tile_n if tile_n is not None else cfg_tn
    splits = num_splits if num_splits is not None else cfg_splits

    tn = min(tn, _round_up(n, 8))
    tiles = _cdiv(n, tn)
    splits = max(1, min(splits, tiles))
    tiles_per_split = _cdiv(tiles, splits)
    n_pad = splits * tiles_per_split * tn

    # x is streamed from HBM once in bf16; L zero-padded to a full 128-lane tile.
    x_p = jnp.pad(x, ((0, n_pad - n), (0, LP - L))).astype(jnp.bfloat16)
    # wa / wb fused into a single (LP, 2D) weight -> one 512-wide MXU matmul.
    w_ab = jnp.pad(jnp.concatenate([params["wa"], params["wb"]], axis=1),
                   ((0, LP - L), (0, 0))).astype(jnp.bfloat16)       # (LP, 2D)
    b_ab = jnp.concatenate([params["ba"], params["bb"]], axis=1)     # (1, 2D) f32
    wc_row = params["wc"].reshape(1, D).astype(jnp.bfloat16)         # (1, D)
    bc = params["bc"].reshape(1, 1)                                  # (1, 1) f32

    kernel = _make_abmil_kernel(n, n_pad, tn, tiles_per_split)

    scores, m_out, l_out, acc_out = pl.pallas_call(
        kernel,
        out_shape=(
            jax.ShapeDtypeStruct((1, n_pad), jnp.float32),           # raw scores
            jax.ShapeDtypeStruct((1, splits * 128), jnp.float32),    # per-split m
            jax.ShapeDtypeStruct((1, splits * 128), jnp.float32),    # per-split l
            jax.ShapeDtypeStruct((1, splits * LP), jnp.float32),     # per-split acc
        ),
        grid_spec=pltpu.PrefetchScalarGridSpec(
            num_scalar_prefetch=0,
            grid=(splits, tiles_per_split),
            in_specs=[
                pl.BlockSpec((tn, LP),
                             lambda c, i: (c * tiles_per_split + i, 0)),  # x stream
                pl.BlockSpec((LP, 2 * D), lambda c, i: (0, 0)),           # fused W_ab
                pl.BlockSpec((1, 2 * D), lambda c, i: (0, 0)),            # fused b_ab
                pl.BlockSpec((1, D), lambda c, i: (0, 0)),                # wc row
                pl.BlockSpec((1, 1), lambda c, i: (0, 0)),                # bc
            ],
            out_specs=(
                pl.BlockSpec((1, tn),
                             lambda c, i: (0, c * tiles_per_split + i)),  # scores
                pl.BlockSpec((1, 128), lambda c, i: (0, c)),              # m
                pl.BlockSpec((1, 128), lambda c, i: (0, c)),              # l
                pl.BlockSpec((1, LP), lambda c, i: (0, c)),               # acc
            ),
            scratch_shapes=[
                pltpu.VMEM((1, 1), jnp.float32),     # running max m
                pltpu.VMEM((1, 1), jnp.float32),     # running denom l
                pltpu.VMEM((1, LP), jnp.float32),    # pooled accumulator
            ],
        ),
        compiler_params=pltpu.CompilerParams(
            dimension_semantics=("parallel", "arbitrary"),
            vmem_limit_bytes=vmem_limit,
        ),
    )(x_p, w_ab, b_ab, wc_row, bc)

    # Merge the per-split online-softmax states (logsumexp-style combine).
    m_parts = m_out.reshape(splits, 128)[:, 0]                       # (S,)
    l_parts = l_out.reshape(splits, 128)[:, 0]                       # (S,)
    acc_parts = acc_out.reshape(splits, LP)                          # (S, LP)
    m_g = jnp.max(m_parts)
    scale = jnp.exp(m_parts - m_g)                                   # (S,)
    l_g = jnp.sum(scale * l_parts)
    bag = (jnp.sum(scale[:, None] * acc_parts, axis=0) / l_g)[:L].reshape(1, L)

    # Classifier epilogue in the wrapper: tiny (1,L)x(L,3) f32 matmul; keeps
    # wcls out of VMEM for the whole grid.
    logits = bag @ params["wcls"] + params["bcls"]
    # Normalize the streamed raw scores into attention weights: one O(N) op.
    attn = (jnp.exp(scores[0, :n] - m_g) / l_g).reshape(1, n)
    return logits, attn


def init_params(key):
    # Deterministic PyTorch-Linear-style uniform(-1/sqrt(fan_in), 1/sqrt(fan_in)).
    ks = jax.random.split(key, 8)

    def u(k, shape, fan_in):
        bound = 1.0 / jnp.sqrt(jnp.float32(fan_in))
        return jax.random.uniform(k, shape, jnp.float32, -bound, bound)

    return {
        "wa":   u(ks[0], (L, D), L),          # attention_a Linear(L, D)
        "ba":   u(ks[1], (1, D), L),
        "wb":   u(ks[2], (L, D), L),          # attention_b Linear(L, D)
        "bb":   u(ks[3], (1, D), L),
        "wc":   u(ks[4], (D, 1), D),          # attention_c Linear(D, 1)
        "bc":   u(ks[5], (1, 1), D),
        "wcls": u(ks[6], (L, N_CLASSES), L),  # classifiers Linear(L, n_classes)
        "bcls": u(ks[7], (1, N_CLASSES), L),
    }


def abmil_reference(wsi_h, params):
    # Pure-JAX f32 reference of the PyTorch forward pass.
    x = wsi_h.reshape(wsi_h.shape[-2], wsi_h.shape[-1])
    a = jnp.tanh(x @ params["wa"] + params["ba"])
    b = jax.nn.sigmoid(x @ params["wb"] + params["bb"])
    s = (a * b) @ params["wc"] + params["bc"]
    p = jax.nn.softmax(s.reshape(1, -1), axis=1)
    m = p @ x
    logits = m @ params["wcls"] + params["bcls"]
    return logits, p


def _check(logits, attn, ref_logits, ref_attn, n):
    assert logits.shape == (1, N_CLASSES)
    assert attn.shape == (1, n)
    assert abs(float(jnp.sum(attn)) - 1.0) < 1e-4
    assert jnp.allclose(logits, ref_logits, atol=5e-2, rtol=5e-2)
    assert jnp.allclose(attn, ref_attn, atol=5e-2, rtol=5e-2)


if __name__ == "__main__":
    key = jax.random.PRNGKey(0)
    pkey, xkey, xkey2 = jax.random.split(key, 3)
    params = init_params(pkey)

    # Small bag: single tile, single split (chip-default config path).
    N = 8
    wsi_h = jax.random.normal(xkey, (1, 1, 1, N, L), jnp.float32)
    logits, attn = abmil_forward(wsi_h, params)
    jax.block_until_ready((logits, attn))
    ref_logits, ref_attn = abmil_reference(wsi_h, params)
    _check(logits, attn, ref_logits, ref_attn, N)

    # Larger bag: exercises multi-tile online softmax, padded-row masking and
    # the 2-split (dual-TensorCore-style) logsumexp merge path.
    N2 = 300
    wsi_h2 = jax.random.normal(xkey2, (1, 1, 1, N2, L), jnp.float32)
    logits2, attn2 = abmil_forward(wsi_h2, params, tile_n=128, num_splits=2)
    jax.block_until_ready((logits2, attn2))
    ref_logits2, ref_attn2 = abmil_reference(wsi_h2, params)
    _check(logits2, attn2, ref_logits2, ref_attn2, N2)

    print("KERNEL_OK")
</pallas_src>

<mosaic_0001>
module attributes {stable_mosaic.version = 11 : i64} {
  func.func @kernel(%arg0: i32, %arg1: i32, %arg2: memref<8x1024xbf16, #tpu.memory_space<vmem>>, %arg3: memref<1024x512xbf16, #tpu.memory_space<vmem>>, %arg4: memref<1x512xf32, #tpu.memory_space<vmem>>, %arg5: memref<1x256xbf16, #tpu.memory_space<vmem>>, %arg6: memref<1x1xf32, #tpu.memory_space<vmem>>, %arg7: memref<1x8xf32, #tpu.memory_space<vmem>>, %arg8: memref<1x128xf32, #tpu.memory_space<vmem>>, %arg9: memref<1x128xf32, #tpu.memory_space<vmem>>, %arg10: memref<1x1024xf32, #tpu.memory_space<vmem>>, %arg11: memref<1x1xf32, #tpu.memory_space<vmem>>, %arg12: memref<1x1xf32, #tpu.memory_space<vmem>>, %arg13: memref<1x1024xf32, #tpu.memory_space<vmem>>) attributes {dimension_semantics = [#tpu.dimension_semantics<parallel>, #tpu.dimension_semantics<arbitrary>], iteration_bounds = array<i64: 1, 1>, scalar_prefetch = 0 : i64, scratch_operands = 3 : i64, tpu.core_type = #tpu.core_type<tc>, window_params = [{transform_indices = @transform_0, window_bounds = array<i64: 8, 1024>}, {pipeline_mode = #tpu.pipeline_mode<synchronous>, transform_indices = @transform_1, window_bounds = array<i64: 1024, 512>}, {pipeline_mode = #tpu.pipeline_mode<synchronous>, transform_indices = @transform_2, window_bounds = array<i64: 1, 512>}, {pipeline_mode = #tpu.pipeline_mode<synchronous>, transform_indices = @transform_3, window_bounds = array<i64: 1, 256>}, {pipeline_mode = #tpu.pipeline_mode<synchronous>, transform_indices = @transform_4, window_bounds = array<i64: 1, 1>}, {transform_indices = @transform_5, window_bounds = array<i64: 1, 8>}, {transform_indices = @transform_6, window_bounds = array<i64: 1, 128>}, {transform_indices = @transform_7, window_bounds = array<i64: 1, 128>}, {transform_indices = @transform_8, window_bounds = array<i64: 1, 1024>}]} {
    %c0_i32 = arith.constant 0 : i32
    %0 = arith.cmpi eq, %arg1, %c0_i32 : i32
    %1 = arith.extui %0 : i1 to i32
    %c0_i32_0 = arith.constant 0 : i32
    %2 = arith.cmpi ne, %1, %c0_i32_0 : i32
    scf.if %2 {
      %cst_31 = arith.constant -1.000000e+30 : f32
      %51 = vector.broadcast %cst_31 : f32 to vector<1x1xf32>
      %c0_32 = arith.constant 0 : index
      %c0_33 = arith.constant 0 : index
      %52 = vector.load %arg11[%c0_32, %c0_33] : memref<1x1xf32, #tpu.memory_space<vmem>>, vector<1x1xf32>
      tpu.vector_store %arg11[%c0_32, %c0_33], %51 {strides = array<i32>} : memref<1x1xf32, #tpu.memory_space<vmem>>, vector<1x1xf32>,
      %cst_34 = arith.constant 0.000000e+00 : f32
      %53 = vector.broadcast %cst_34 : f32 to vector<1x1xf32>
      %c0_35 = arith.constant 0 : index
      %c0_36 = arith.constant 0 : index
      %54 = vector.load %arg12[%c0_35, %c0_36] : memref<1x1xf32, #tpu.memory_space<vmem>>, vector<1x1xf32>
      tpu.vector_store %arg12[%c0_35, %c0_36], %53 {strides = array<i32>} : memref<1x1xf32, #tpu.memory_space<vmem>>, vector<1x1xf32>,
      %cst_37 = arith.constant 0.000000e+00 : f32
      %55 = vector.broadcast %cst_37 : f32 to vector<1x1024xf32>
      %c0_38 = arith.constant 0 : index
      %c0_39 = arith.constant 0 : index
      %56 = vector.load %arg13[%c0_38, %c0_39] : memref<1x1024xf32, #tpu.memory_space<vmem>>, vector<1x1024xf32>
      tpu.vector_store %arg13[%c0_38, %c0_39], %55 {strides = array<i32>} : memref<1x1024xf32, #tpu.memory_space<vmem>>, vector<1x1024xf32>,
    } else {
    }
    %c0 = arith.constant 0 : index
    %c0_1 = arith.constant 0 : index
    %3 = vector.load %arg2[%c0, %c0_1] : memref<8x1024xbf16, #tpu.memory_space<vmem>>, vector<8x1024xbf16>
    %c0_2 = arith.constant 0 : index
    %c0_3 = arith.constant 0 : index
    %4 = vector.load %arg3[%c0_2, %c0_3] : memref<1024x512xbf16, #tpu.memory_space<vmem>>, vector<1024x512xbf16>
    %cst = arith.constant dense<0.000000e+00> : vector<8x512xf32>
    %5 = tpu.matmul %3, %4, %cst {dimension_numbers = #tpu.dot_dimension_numbers<[1], [0], [0], [1], [0, 0, 1, 1], [], []>} : vector<8x1024xbf16>, vector<1024x512xbf16>, vector<8x512xf32> -> vector<8x512xf32>
    %c0_4 = arith.constant 0 : index
    %c0_5 = arith.constant 0 : index
    %6 = vector.load %arg4[%c0_4, %c0_5] : memref<1x512xf32, #tpu.memory_space<vmem>>, vector<1x512xf32>
    %7 = vector.broadcast %6 : vector<1x512xf32> to vector<8x512xf32>
    %8 = arith.addf %5, %7 : vector<8x512xf32>
    %9 = vector.extract_strided_slice %8 {offsets = [0, 0], sizes = [8, 256], strides = [1, 1]} : vector<8x512xf32> to vector<8x256xf32>
    %10 = math.tanh %9 : vector<8x256xf32>
    %11 = vector.extract_strided_slice %8 {offsets = [0, 256], sizes = [8, 256], strides = [1, 1]} : vector<8x512xf32> to vector<8x256xf32>
    %12 = arith.negf %11 : vector<8x256xf32>
    %13 = math.exp %12 : vector<8x256xf32>
    %cst_6 = arith.constant 1.000000e+00 : f32
    %14 = vector.broadcast %cst_6 : f32 to vector<8x256xf32>
    %15 = arith.addf %14, %13 : vector<8x256xf32>
    %16 = arith.divf %14, %15 : vector<8x256xf32>
    %17 = arith.mulf %10, %16 : vector<8x256xf32>
    %18 = arith.truncf %17 : vector<8x256xf32> to vector<8x256xbf16>
    %c0_7 = arith.constant 0 : index
    %c0_8 = arith.constant 0 : index
    %19 = vector.load %arg5[%c0_7, %c0_8] : memref<1x256xbf16, #tpu.memory_space<vmem>>, vector<1x256xbf16>
    %cst_9 = arith.constant dense<0.000000e+00> : vector<1x8xf32>
    %20 = tpu.matmul %19, %18, %cst_9 {dimension_numbers = #tpu.dot_dimension_numbers<[1], [1], [0], [0], [0, 0, 1, 0], [], []>} : vector<1x256xbf16>, vector<8x256xbf16>, vector<1x8xf32> -> vector<1x8xf32>
    %c0_10 = arith.constant 0 : index
    %c0_11 = arith.constant 0 : index
    %21 = vector.load %arg6[%c0_10, %c0_11] : memref<1x1xf32, #tpu.memory_space<vmem>>, vector<1x1xf32>
    %22 = vector.broadcast %21 : vector<1x1xf32> to vector<1x8xf32>
    %23 = arith.addf %20, %22 : vector<1x8xf32>
    %c0_12 = arith.constant 0 : index
    %c0_13 = arith.constant 0 : index
    %24 = vector.load %arg7[%c0_12, %c0_13] : memref<1x8xf32, #tpu.memory_space<vmem>>, vector<1x8xf32>
    tpu.vector_store %arg7[%c0_12, %c0_13], %23 {strides = array<i32>} : memref<1x8xf32, #tpu.memory_space<vmem>>, vector<1x8xf32>,
    %c0_14 = arith.constant 0 : index
    %c0_15 = arith.constant 0 : index
    %25 = vector.load %arg11[%c0_14, %c0_15] : memref<1x1xf32, #tpu.memory_space<vmem>>, vector<1x1xf32>
    %cst_16 = arith.constant dense<0xFF800000> : vector<1xf32>
    %26 = vector.multi_reduction <maximumf>, %23, %cst_16 [1] : vector<1x8xf32> to vector<1xf32>
    %27 = vector.shape_cast %26 : vector<1xf32> to vector<1x1xf32>
    %28 = arith.maximumf %25, %27 : vector<1x1xf32>
    %29 = arith.subf %25, %28 : vector<1x1xf32>
    %30 = math.exp %29 : vector<1x1xf32>
    %31 = vector.broadcast %28 : vector<1x1xf32> to vector<1x8xf32>
    %32 = arith.subf %23, %31 : vector<1x8xf32>
    %33 = math.exp %32 : vector<1x8xf32>
    %c0_17 = arith.constant 0 : index
    %c0_18 = arith.constant 0 : index
    %34 = vector.load %arg12[%c0_17, %c0_18] : memref<1x1xf32, #tpu.memory_space<vmem>>, vector<1x1xf32>
    %35 = arith.mulf %30, %34 : vector<1x1xf32>
    %cst_19 = arith.constant dense<0.000000e+00> : vector<1xf32>
    %36 = vector.multi_reduction <add>, %33, %cst_19 [1] : vector<1x8xf32> to vector<1xf32>
    %37 = vector.shape_cast %36 : vector<1xf32> to vector<1x1xf32>
    %38 = arith.addf %35, %37 : vector<1x1xf32>
    %c0_20 = arith.constant 0 : index
    %c0_21 = arith.constant 0 : index
    %39 = vector.load %arg12[%c0_20, %c0_21] : memref<1x1xf32, #tpu.memory_space<vmem>>, vector<1x1xf32>
    tpu.vector_store %arg12[%c0_20, %c0_21], %38 {strides = array<i32>} : memref<1x1xf32, #tpu.memory_space<vmem>>, vector<1x1xf32>,
    %40 = arith.truncf %33 : vector<1x8xf32> to vector<1x8xbf16>
    %cst_22 = arith.constant dense<0.000000e+00> : vector<1x1024xf32>
    %41 = tpu.matmul %40, %3, %cst_22 {dimension_numbers = #tpu.dot_dimension_numbers<[1], [0], [0], [1], [0, 0, 1, 1], [], []>} : vector<1x8xbf16>, vector<8x1024xbf16>, vector<1x1024xf32> -> vector<1x1024xf32>
    %c0_23 = arith.constant 0 : index
    %c0_24 = arith.constant 0 : index
    %42 = vector.load %arg13[%c0_23, %c0_24] : memref<1x1024xf32, #tpu.memory_space<vmem>>, vector<1x1024xf32>
    %43 = vector.broadcast %30 : vector<1x1xf32> to vector<1x1024xf32>
    %44 = arith.mulf %43, %42 : vector<1x1024xf32>
    %45 = arith.addf %44, %41 : vector<1x1024xf32>
    %c0_25 = arith.constant 0 : index
    %c0_26 = arith.constant 0 : index
    %46 = vector.load %arg13[%c0_25, %c0_26] : memref<1x1024xf32, #tpu.memory_space<vmem>>, vector<1x1024xf32>
    tpu.vector_store %arg13[%c0_25, %c0_26], %45 {strides = array<i32>} : memref<1x1024xf32, #tpu.memory_space<vmem>>, vector<1x1024xf32>,
    %c0_27 = arith.constant 0 : index
    %c0_28 = arith.constant 0 : index
    %47 = vector.load %arg11[%c0_27, %c0_28] : memref<1x1xf32, #tpu.memory_space<vmem>>, vector<1x1xf32>
    tpu.vector_store %arg11[%c0_27, %c0_28], %28 {strides = array<i32>} : memref<1x1xf32, #tpu.memory_space<vmem>>, vector<1x1xf32>,
    %c0_i32_29 = arith.constant 0 : i32
    %48 = arith.cmpi eq, %arg1, %c0_i32_29 : i32
    %49 = arith.extui %48 : i1 to i32
    %c0_i32_30 = arith.constant 0 : i32
    %50 = arith.cmpi ne, %49, %c0_i32_30 : i32
    scf.if %50 {
      %c0_31 = arith.constant 0 : index
      %c0_32 = arith.constant 0 : index
      %51 = vector.load %arg11[%c0_31, %c0_32] : memref<1x1xf32, #tpu.memory_space<vmem>>, vector<1x1xf32>
      %52 = vector.shape_cast %51 : vector<1x1xf32> to vector<1x1xf32>
      %53 = vector.broadcast %52 : vector<1x1xf32> to vector<1x128xf32>
      %c0_33 = arith.constant 0 : index
      %c0_34 = arith.constant 0 : index
      %54 = vector.load %arg8[%c0_33, %c0_34] : memref<1x128xf32, #tpu.memory_space<vmem>>, vector<1x128xf32>
      tpu.vector_store %arg8[%c0_33, %c0_34], %53 {strides = array<i32>} : memref<1x128xf32, #tpu.memory_space<vmem>>, vector<1x128xf32>,
      %c0_35 = arith.constant 0 : index
      %c0_36 = arith.constant 0 : index
      %55 = vector.load %arg12[%c0_35, %c0_36] : memref<1x1xf32, #tpu.memory_space<vmem>>, vector<1x1xf32>
      %56 = vector.shape_cast %55 : vector<1x1xf32> to vector<1x1xf32>
      %57 = vector.broadcast %56 : vector<1x1xf32> to vector<1x128xf32>
      %c0_37 = arith.constant 0 : index
      %c0_38 = arith.constant 0 : index
      %58 = vector.load %arg9[%c0_37, %c0_38] : memref<1x128xf32, #tpu.memory_space<vmem>>, vector<1x128xf32>
      tpu.vector_store %arg9[%c0_37, %c0_38], %57 {strides = array<i32>} : memref<1x128xf32, #tpu.memory_space<vmem>>, vector<1x128xf32>,
      %c0_39 = arith.constant 0 : index
      %c0_40 = arith.constant 0 : index
      %59 = vector.load %arg13[%c0_39, %c0_40] : memref<1x1024xf32, #tpu.memory_space<vmem>>, vector<1x1024xf32>
      %c0_41 = arith.constant 0 : index
      %c0_42 = arith.constant 0 : index
      %60 = vector.load %arg10[%c0_41, %c0_42] : memref<1x1024xf32, #tpu.memory_space<vmem>>, vector<1x1024xf32>
      tpu.vector_store %arg10[%c0_41, %c0_42], %59 {strides = array<i32>} : memref<1x1024xf32, #tpu.memory_space<vmem>>, vector<1x1024xf32>,
    } else {
    }
    return
  }
  func.func @transform_0(%arg0: i32, %arg1: i32) -> (i32, i32) {
    %c1_i32 = arith.constant 1 : i32
    %0 = arith.muli %arg0, %c1_i32 : i32
    %1 = arith.addi %0, %arg1 : i32
    %c0_i32 = arith.constant 0 : i32
    %c0_i32_0 = arith.constant 0 : i32
    return %1, %c0_i32 : i32, i32
  }
  func.func @transform_1(%arg0: i32, %arg1: i32) -> (i32, i32) {
    %c0_i32 = arith.constant 0 : i32
    %c0_i32_0 = arith.constant 0 : i32
    %c0_i32_1 = arith.constant 0 : i32
    return %c0_i32, %c0_i32_0 : i32, i32
  }
  func.func @transform_2(%arg0: i32, %arg1: i32) -> (i32, i32) {
    %c0_i32 = arith.constant 0 : i32
    %c0_i32_0 = arith.constant 0 : i32
    %c0_i32_1 = arith.constant 0 : i32
    return %c0_i32, %c0_i32_0 : i32, i32
  }
  func.func @transform_3(%arg0: i32, %arg1: i32) -> (i32, i32) {
    %c0_i32 = arith.constant 0 : i32
    %c0_i32_0 = arith.constant 0 : i32
    %c0_i32_1 = arith.constant 0 : i32
    return %c0_i32, %c0_i32_0 : i32, i32
  }
  func.func @transform_4(%arg0: i32, %arg1: i32) -> (i32, i32) {
    %c0_i32 = arith.constant 0 : i32
    %c0_i32_0 = arith.constant 0 : i32
    %c0_i32_1 = arith.constant 0 : i32
    return %c0_i32, %c0_i32_0 : i32, i32
  }
  func.func @transform_5(%arg0: i32, %arg1: i32) -> (i32, i32) {
    %c1_i32 = arith.constant 1 : i32
    %0 = arith.muli %arg0, %c1_i32 : i32
    %1 = arith.addi %0, %arg1 : i32
    %c0_i32 = arith.constant 0 : i32
    %c0_i32_0 = arith.constant 0 : i32
    return %c0_i32, %1 : i32, i32
  }
  func.func @transform_6(%arg0: i32, %arg1: i32) -> (i32, i32) {
    %c0_i32 = arith.constant 0 : i32
    %c0_i32_0 = arith.constant 0 : i32
    return %c0_i32, %arg0 : i32, i32
  }
  func.func @transform_7(%arg0: i32, %arg1: i32) -> (i32, i32) {
    %c0_i32 = arith.constant 0 : i32
    %c0_i32_0 = arith.constant 0 : i32
    return %c0_i32, %arg0 : i32, i32
  }
  func.func @transform_8(%arg0: i32, %arg1: i32) -> (i32, i32) {
    %c0_i32 = arith.constant 0 : i32
    %c0_i32_0 = arith.constant 0 : i32
    return %c0_i32, %arg0 : i32, i32
  }
}

</mosaic_0001>

<bundles_post_ra>
// kernel: tpu_custom_call.1
= control target key start
LH: loop header
LB: loop body
LE: loop exit
PB: predicated region body
PF: predicated region fallthrough
CT: control target
= control target key end

     0   :  { %s3574_s0 = inlined_call_operand.hbm [shape: bf16[8,1024], index: 0, kind: input, shape index: {}]   ;;  %s3575_s1 = inlined_call_operand.hbm [shape: bf16[1024,512], index: 1, kind: input, shape index: {}]   ;;  %s3576_s2 = inlined_call_operand.vmem [shape: f32[1,512], index: 2, kind: input, shape index: {}]   ;;  %s3577_s3 = inlined_call_operand.vmem [shape: bf16[1,256], index: 3, kind: input, shape index: {}]   ;;  %s3578_s4 = inlined_call_operand.<no memory space> [shape: f32[1,1], index: 4, kind: input, shape index: {}]   ;;  %s3579_s5 = inlined_call_operand.hbm [shape: f32[1,8], index: 5, kind: output, shape index: {0}]   ;;  %s3580_s6 = inlined_call_operand.hbm [shape: f32[1,128], index: 6, kind: output, shape index: {1}]   ;;  %s3581_s7 = inlined_call_operand.hbm [shape: f32[1,128], index: 7, kind: output, shape index: {2}]   ;;  %s3582_s8 = inlined_call_operand.hbm [shape: f32[1,1024], index: 8, kind: output, shape index: {3}]  }
   0x1   :  { %v14_v0 = vstv %s3578_s4 }
   0x2   :  { %15 = vst [vmem:[#allocation5] sm:$0x1] %v14_v0 }
   0x3   :  { %16 = vsyncpa [#allocation7], 0 }
   0x4   :  { %17 = vsyncpa [#allocation10], 0 }
   0x5   :  { %18 = vsyncpa [#allocation8], 0 }
   0x6   :  { %19 = vsyncpa [#allocation13], 0 }
   0x7   :  { %20 = vsyncpa [#allocation16], 0  ;;  %s3332_s29 = smov [#allocation6]   ;;  %s3333_s9 = smov [#allocation9]  }
   0x8   :  { %s31_s30 = sshll.u32 %s3332_s29, 4  ;;  %s40_s10 = sshll.u32 %s3333_s9, 4  ;;  %s32_s30 = int_to_ptr.vmem [resolvable:$true] %s31_s30  ;;  %s3392_s10 = int_to_ptr.vmem [resolvable:$true] %s40_s10 }
   0x9   :  { %s3190_s13 = scalar_lea.hbm %s3574_s0, 512 }
   0xa   :  { %p3191_p0 = scmp.ne.s32.totalorder %s3574_s0, %s3190_s13  ;;  %p3194_p1 = scmp.lt.u32.totalorder %s3190_s13, %s3574_s0 }
   0xc   :  { %p3196_p2 = pnand %p3194_p1, %p3191_p0 }
   0xe   :  { %3199 = shalt.err (!%p3196_p2)
}
   0xf   :  { %s3200_s17 = scalar_lea.vmem %s32_s30, 512  ;;  %p3205_p4 = scmp.lt.s32.totalorder %s32_s30, %s32_s30 }
  0x10   :  { %p3201_p3 = scmp.ne.s32.totalorder %s32_s30, %s3200_s17  ;;  %p3206_p5 = scmp.lt.s32.totalorder %s3200_s17, %s3200_s17 }
  0x12   :  { %p3207_p6 = por %p3206_p5, %p3205_p4 }
  0x14   :  { %p3208_p7 = pnand %p3207_p6, %p3201_p3 }
  0x16   :  { %3211 = shalt.err (!%p3208_p7)
}
  0x17   :  { %34 = dma.hbm_to_vmem [thread:$0]  %s3574_s0, 512, %s32_s30, [#allocation7]  }
  0x18   :  { %s3212_s22 = scalar_lea.hbm %s3575_s1, 32768 }
  0x19   :  { %p3213_p8 = scmp.ne.s32.totalorder %s3575_s1, %s3212_s22  ;;  %p3216_p9 = scmp.lt.u32.totalorder %s3212_s22, %s3575_s1 }
  0x1b   :  { %p3218_p10 = pnand %p3216_p9, %p3213_p8 }
  0x1d   :  { %3221 = shalt.err (!%p3218_p10)
}
  0x1e   :  { %s3222_s27 = scalar_lea.vmem %s3392_s10, 32768  ;;  %p3227_p12 = scmp.lt.s32.totalorder %s3392_s10, %s3392_s10 }
  0x1f   :  { %p3223_p11 = scmp.ne.s32.totalorder %s3392_s10, %s3222_s27  ;;  %p3228_p13 = scmp.lt.s32.totalorder %s3222_s27, %s3222_s27 }
  0x21   :  { %p3229_p0 = por %p3228_p13, %p3227_p12 }
  0x23   :  { %p3230_p1 = pnand %p3229_p0, %p3223_p11 }
  0x25   :  { %3233 = shalt.err (!%p3230_p1)
}
  0x26   :  { %s3334_s0 = smov 256   ;;  %s3335_s28 = smov 16  }
  0x27   :  { %46 = dma.hbm_to_vmem [thread:$0]  %s3575_s1, 32768, %s3392_s10, [#allocation10], %s3334_s0, %s3334_s0, %s3335_s28  }
  0x28   :  { %3322 = dma.done.wait [#allocation7], 512  }
  0x29   :  { %3323 = vsyncadd [#allocation7], 4294966784 }
  0x2a   :  { %3324 = dma.done.wait [#allocation10], 32768  }
  0x2b   :  { %3325 = vsyncadd [#allocation10], 4294934528  ;;  %v2782_v1 = vld [vmem:[#allocation9 + $0x4] ss:$16 sps:$4 sm:$0xff]   ;;  %v2784_v2 = vld [vmem:[#allocation9 + $0xc] ss:$16 sps:$4 sm:$0xff]  }
  0x2c   :  { %1660 = vmatprep.subr.bf16.mxu0 %v2782_v1  ;;  %v2786_v3 = vld [vmem:[#allocation9] ss:$16 sps:$4 sm:$0xff]   ;;  %v2787_v4 = vld [vmem:[#allocation9 + $0x8] ss:$16 sps:$4 sm:$0xff]   ;;  %1824 = vmatprep.subr.bf16.mxu1 %v2784_v2  ;;  %v2788_v5 = vld [vmem:[#allocation9 + $0x24] ss:$16 sps:$4 sm:$0xff]  }
  0x2d   :  { %1661 = vmatpush1.bf16.msra.mxu0 %v2786_v3  ;;  %1825 = vmatpush1.bf16.msra.mxu1 %v2787_v4  ;;  %v2790_v6 = vld [vmem:[#allocation9 + $0x2c] ss:$16 sps:$4 sm:$0xff]   ;;  %v2792_v7 = vld [vmem:[#allocation9 + $0x20] ss:$16 sps:$4 sm:$0xff]   ;;  %v2793_v8 = vld [vmem:[#allocation9 + $0x28] ss:$16 sps:$4 sm:$0xff]  }
  0x2e   :  { %1662 = vmatprep.subr.bf16.mxu0 %v2788_v5  ;;  %1826 = vmatprep.subr.bf16.mxu1 %v2790_v6  ;;  %v2794_v9 = vld [vmem:[#allocation9 + $0x44] ss:$16 sps:$4 sm:$0xff]   ;;  %v2796_v10 = vld [vmem:[#allocation9 + $0x4c] ss:$16 sps:$4 sm:$0xff]   ;;  %v2798_v11 = vld [vmem:[#allocation9 + $0x40] ss:$16 sps:$4 sm:$0xff]  }
  0x2f   :  { %v2799_v12 = vld [vmem:[#allocation9 + $0x48] ss:$16 sps:$4 sm:$0xff]   ;;  %v2800_v13 = vld [vmem:[#allocation9 + $0x64] ss:$16 sps:$4 sm:$0xff]   ;;  %v2802_v14 = vld [vmem:[#allocation9 + $0x6c] ss:$16 sps:$4 sm:$0xff]  }
  0x30   :  { %v2804_v15 = vld [vmem:[#allocation9 + $0x60] ss:$16 sps:$4 sm:$0xff]   ;;  %v2805_v16 = vld [vmem:[#allocation9 + $0x68] ss:$16 sps:$4 sm:$0xff]   ;;  %v2806_v17 = vld [vmem:[#allocation9 + $0x84] ss:$16 sps:$4 sm:$0xff]  }
  0x31   :  { %1663 = vmatpush1.bf16.msra.mxu0 %v2792_v7  ;;  %1827 = vmatpush1.bf16.msra.mxu1 %v2793_v8  ;;  %v2808_v18 = vld [vmem:[#allocation9 + $0x8c] ss:$16 sps:$4 sm:$0xff]   ;;  %v2810_v19 = vld [vmem:[#allocation9 + $0x80] ss:$16 sps:$4 sm:$0xff]   ;;  %v2811_v20 = vld [vmem:[#allocation9 + $0x88] ss:$16 sps:$4 sm:$0xff]  }
  0x32   :  { %1664 = vmatprep.subr.bf16.mxu0 %v2794_v9  ;;  %1828 = vmatprep.subr.bf16.mxu1 %v2796_v10  ;;  %v2812_v21 = vld [vmem:[#allocation9 + $0xa4] ss:$16 sps:$4 sm:$0xff]   ;;  %v2814_v22 = vld [vmem:[#allocation9 + $0xac] ss:$16 sps:$4 sm:$0xff]   ;;  %v2816_v23 = vld [vmem:[#allocation9 + $0xa0] ss:$16 sps:$4 sm:$0xff]  }
  0x33   :  { %v2817_v24 = vld [vmem:[#allocation9 + $0xa8] ss:$16 sps:$4 sm:$0xff]   ;;  %v2818_v25 = vld [vmem:[#allocation9 + $0xc4] ss:$16 sps:$4 sm:$0xff]   ;;  %v2820_v26 = vld [vmem:[#allocation9 + $0xcc] ss:$16 sps:$4 sm:$0xff]  }
  0x34   :  { %v2822_v27 = vld [vmem:[#allocation9 + $0xc0] ss:$16 sps:$4 sm:$0xff]   ;;  %v2823_v28 = vld [vmem:[#allocation9 + $0xc8] ss:$16 sps:$4 sm:$0xff]   ;;  %v2824_v29 = vld [vmem:[#allocation9 + $0xe4] ss:$16 sps:$4 sm:$0xff]  }
  0x35   :  { %1665 = vmatpush1.bf16.msra.mxu0 %v2798_v11  ;;  %1829 = vmatpush1.bf16.msra.mxu1 %v2799_v12  ;;  %v2826_v30 = vld [vmem:[#allocation9 + $0xec] ss:$16 sps:$4 sm:$0xff]   ;;  %v2828_v31 = vld [vmem:[#allocation9 + $0xe0] ss:$16 sps:$4 sm:$0xff]   ;;  %v2829_v32 = vld [vmem:[#allocation9 + $0xe8] ss:$16 sps:$4 sm:$0xff]  }
  0x36   :  { %1666 = vmatprep.subr.bf16.mxu0 %v2800_v13  ;;  %1830 = vmatprep.subr.bf16.mxu1 %v2802_v14  ;;  %v2830_v33 = vld [vmem:[#allocation9 + $0x104] ss:$16 sps:$4 sm:$0xff]   ;;  %v2832_v34 = vld [vmem:[#allocation9 + $0x10c] ss:$16 sps:$4 sm:$0xff]   ;;  %v2834_v35 = vld [vmem:[#allocation9 + $0x100] ss:$16 sps:$4 sm:$0xff]  }
  0x37   :  { %v2835_v36 = vld [vmem:[#allocation9 + $0x108] ss:$16 sps:$4 sm:$0xff]   ;;  %v2836_v37 = vld [vmem:[#allocation9 + $0x124] ss:$16 sps:$4 sm:$0xff]   ;;  %v2838_v38 = vld [vmem:[#allocation9 + $0x12c] ss:$16 sps:$4 sm:$0xff]  }
  0x38   :  { %v2840_v39 = vld [vmem:[#allocation9 + $0x120] ss:$16 sps:$4 sm:$0xff]   ;;  %v2841_v40 = vld [vmem:[#allocation9 + $0x128] ss:$16 sps:$4 sm:$0xff]   ;;  %v2842_v41 = vld [vmem:[#allocation9 + $0x144] ss:$16 sps:$4 sm:$0xff]  }
  0x39   :  { %1667 = vmatpush1.bf16.msra.mxu0 %v2804_v15  ;;  %1831 = vmatpush1.bf16.msra.mxu1 %v2805_v16  ;;  %v2844_v42 = vld [vmem:[#allocation9 + $0x14c] ss:$16 sps:$4 sm:$0xff]   ;;  %v2846_v43 = vld [vmem:[#allocation9 + $0x140] ss:$16 sps:$4 sm:$0xff]   ;;  %v2847_v44 = vld [vmem:[#allocation9 + $0x148] ss:$16 sps:$4 sm:$0xff]  }
  0x3a   :  { %1668 = vmatprep.subr.bf16.mxu0 %v2806_v17  ;;  %1832 = vmatprep.subr.bf16.mxu1 %v2808_v18  ;;  %v2848_v45 = vld [vmem:[#allocation9 + $0x164] ss:$16 sps:$4 sm:$0xff]   ;;  %v2850_v46 = vld [vmem:[#allocation9 + $0x16c] ss:$16 sps:$4 sm:$0xff]   ;;  %v2852_v48 = vld [vmem:[#allocation9 + $0x160] ss:$16 sps:$4 sm:$0xff]  }
  0x3b   :  { %v70_v47 = vld [vmem:[#allocation6] sm:$0xff]  ;;  %v2853_v50 = vld [vmem:[#allocation9 + $0x168] ss:$16 sps:$4 sm:$0xff]   ;;  %v2856_v52 = vld [vmem:[#allocation9 + $0x18c] ss:$16 sps:$4 sm:$0xff]   ;;  %vm66_vm0 = vcmask 0  }
  0x3c   :  { %v3423_v49 = vcombine.high %v70_v47, %v70_v47  ;;  %v2854_v51 = vld [vmem:[#allocation9 + $0x184] ss:$16 sps:$4 sm:$0xff]   ;;  %v2858_v53 = vld [vmem:[#allocation9 + $0x180] ss:$16 sps:$4 sm:$0xff]   ;;  %v2859_v54 = vld [vmem:[#allocation9 + $0x188] ss:$16 sps:$4 sm:$0xff]   ;;  %v3427_v6 = vcombine.low %v70_v47, %v70_v47 }
  0x3d   :  { %1669 = vmatpush1.bf16.msra.mxu0 %v2810_v19  ;;  %1833 = vmatpush1.bf16.msra.mxu1 %v2811_v20  ;;  %v2860_v55 = vld [vmem:[#allocation9 + $0x1a4] ss:$16 sps:$4 sm:$0xff]   ;;  %v2862_v56 = vld [vmem:[#allocation9 + $0x1ac] ss:$16 sps:$4 sm:$0xff]   ;;  %v2864_v57 = vld [vmem:[#allocation9 + $0x1a0] ss:$16 sps:$4 sm:$0xff]  }
  0x3e   :  { %1670 = vmatprep.subr.bf16.mxu0 %v2812_v21  ;;  %1834 = vmatprep.subr.bf16.mxu1 %v2814_v22  ;;  %v2865_v58 = vld [vmem:[#allocation9 + $0x1a8] ss:$16 sps:$4 sm:$0xff]   ;;  %v2866_v59 = vld [vmem:[#allocation9 + $0x1c4] ss:$16 sps:$4 sm:$0xff]   ;;  %v2868_v60 = vld [vmem:[#allocation9 + $0x1cc] ss:$16 sps:$4 sm:$0xff]  }
  0x3f   :  { %1692 = vmatprep.mubr.bf16.mxu0 %v3423_v49  ;;  %1856 = vmatprep.mubr.bf16.mxu1 %v3423_v49  ;;  %v2870_v61 = vld [vmem:[#allocation9 + $0x1c0] ss:$16 sps:$4 sm:$0xff]   ;;  %v2871_v62 = vld [vmem:[#allocation9 + $0x1c8] ss:$16 sps:$4 sm:$0xff]   ;;  %v2872_v63 = vld [vmem:[#allocation9 + $0x1e4] ss:$16 sps:$4 sm:$0xff]  }
  0x40   :  { %v2874_v0 = vld [vmem:[#allocation9 + $0x1ec] ss:$16 sps:$4 sm:$0xff]   ;;  %v2876_v1 = vld [vmem:[#allocation9 + $0x1e0] ss:$16 sps:$4 sm:$0xff]   ;;  %v2877_v2 = vld [vmem:[#allocation9 + $0x1e8] ss:$16 sps:$4 sm:$0xff]  }
  0x41   :  { %1671 = vmatpush1.bf16.msra.mxu0 %v2816_v23  ;;  %1835 = vmatpush1.bf16.msra.mxu1 %v2817_v24  ;;  %v2881_v3 = vld [vmem:[#allocation9 + $0x204] ss:$16 sps:$4 sm:$0xff]   ;;  %v2884_v4 = vld [vmem:[#allocation9 + $0x20c] ss:$16 sps:$4 sm:$0xff]   ;;  %v2879_v5 = vld [vmem:[#allocation9 + $0x200] ss:$16 sps:$4 sm:$0xff]  }
  0x42   :  { %1672 = vmatprep.subr.bf16.mxu0 %v2818_v25  ;;  %1836 = vmatprep.subr.bf16.mxu1 %v2820_v26  ;;  %v2882_v7 = vld [vmem:[#allocation9 + $0x208] ss:$16 sps:$4 sm:$0xff]   ;;  %v2888_v8 = vld [vmem:[#allocation9 + $0x224] ss:$16 sps:$4 sm:$0xff]   ;;  %v2891_v9 = vld [vmem:[#allocation9 + $0x22c] ss:$16 sps:$4 sm:$0xff]  }
  0x43   :  { %v2886_v10 = vld [vmem:[#allocation9 + $0x220] ss:$16 sps:$4 sm:$0xff]   ;;  %v2889_v11 = vld [vmem:[#allocation9 + $0x228] ss:$16 sps:$4 sm:$0xff]   ;;  %v2894_v12 = vld [vmem:[#allocation9 + $0x244] ss:$16 sps:$4 sm:$0xff]  }
  0x44   :  { %v2897_v13 = vld [vmem:[#allocation9 + $0x24c] ss:$16 sps:$4 sm:$0xff]   ;;  %v2892_v14 = vld [vmem:[#allocation9 + $0x240] ss:$16 sps:$4 sm:$0xff]   ;;  %v2895_v15 = vld [vmem:[#allocation9 + $0x248] ss:$16 sps:$4 sm:$0xff]  }
  0x45   :  { %1673 = vmatpush1.bf16.msra.mxu0 %v2822_v27  ;;  %1837 = vmatpush1.bf16.msra.mxu1 %v2823_v28  ;;  %v2900_v16 = vld [vmem:[#allocation9 + $0x264] ss:$16 sps:$4 sm:$0xff]   ;;  %v2903_v17 = vld [vmem:[#allocation9 + $0x26c] ss:$16 sps:$4 sm:$0xff]   ;;  %v2898_v18 = vld [vmem:[#allocation9 + $0x260] ss:$16 sps:$4 sm:$0xff]  }
  0x46   :  { %1674 = vmatprep.subr.bf16.mxu0 %v2824_v29  ;;  %1838 = vmatprep.subr.bf16.mxu1 %v2826_v30  ;;  %v2901_v19 = vld [vmem:[#allocation9 + $0x268] ss:$16 sps:$4 sm:$0xff]   ;;  %v2906_v20 = vld [vmem:[#allocation9 + $0x284] ss:$16 sps:$4 sm:$0xff]   ;;  %v2909_v21 = vld [vmem:[#allocation9 + $0x28c] ss:$16 sps:$4 sm:$0xff]  }
  0x47   :  { %v2904_v22 = vld [vmem:[#allocation9 + $0x280] ss:$16 sps:$4 sm:$0xff]   ;;  %v2907_v23 = vld [vmem:[#allocation9 + $0x288] ss:$16 sps:$4 sm:$0xff]   ;;  %v2912_v24 = vld [vmem:[#allocation9 + $0x2a4] ss:$16 sps:$4 sm:$0xff]  }
  0x48   :  { %v2915_v25 = vld [vmem:[#allocation9 + $0x2ac] ss:$16 sps:$4 sm:$0xff]   ;;  %v2910_v26 = vld [vmem:[#allocation9 + $0x2a0] ss:$16 sps:$4 sm:$0xff]   ;;  %v2913_v27 = vld [vmem:[#allocation9 + $0x2a8] ss:$16 sps:$4 sm:$0xff]  }
  0x49   :  { %1675 = vmatpush1.bf16.msra.mxu0 %v2828_v31  ;;  %1839 = vmatpush1.bf16.msra.mxu1 %v2829_v32  ;;  %v2918_v28 = vld [vmem:[#allocation9 + $0x2c4] ss:$16 sps:$4 sm:$0xff]   ;;  %v2921_v29 = vld [vmem:[#allocation9 + $0x2cc] ss:$16 sps:$4 sm:$0xff]   ;;  %v2916_v32 = vld [vmem:[#allocation9 + $0x2c0] ss:$16 sps:$4 sm:$0xff]  }
  0x4a   :  { %1676 = vmatprep.subr.bf16.mxu0 %v2830_v33  ;;  %1840 = vmatprep.subr.bf16.mxu1 %v2832_v34  ;;  %v3431_v30 = vld [vmem:[#allocation6 + $0x8] sm:$0xff]  ;;  %v2924_v34 = vld [vmem:[#allocation9 + $0x2e4] ss:$16 sps:$4 sm:$0xff]   ;;  %vm2082_vm1 = vcmask 57344   ;;  %vm2117_vm2 = vcmask 1043456   ;;  %vm2113_vm3 = vcmask 64512  }
  0x4b   :  { %v3435_v31 = vcombine.high %v3431_v30, %v3431_v30  ;;  %v2919_v33 = vld [vmem:[#allocation9 + $0x2c8] ss:$16 sps:$4 sm:$0xff]   ;;  %v2945_v47 = vld [vmem:[#allocation9 + $0x34c] ss:$16 sps:$4 sm:$0xff]   ;;  %s3341_s12 = smov [#allocation11]  }
  0x4c   :  { %s2414_s13 = sshll.u32 %s3341_s12, 4  ;;  %s2415_s13 = int_to_ptr.vmem [resolvable:$true] %s2414_s13 }
  0x4d   :  { %1677 = vmatpush1.bf16.msra.mxu0 %v2834_v35  ;;  %1841 = vmatpush1.bf16.msra.mxu1 %v2835_v36  ;;  %v2927_v35 = vld [vmem:[#allocation9 + $0x2ec] ss:$16 sps:$4 sm:$0xff]   ;;  %v2922_v36 = vld [vmem:[#allocation9 + $0x2e0] ss:$16 sps:$4 sm:$0xff]  }
  0x4e   :  { %1678 = vmatprep.subr.bf16.mxu0 %v2836_v37  ;;  %1842 = vmatprep.subr.bf16.mxu1 %v2838_v38  ;;  %v2925_v37 = vld [vmem:[#allocation9 + $0x2e8] ss:$16 sps:$4 sm:$0xff]   ;;  %v2930_v38 = vld [vmem:[#allocation9 + $0x304] ss:$16 sps:$4 sm:$0xff]  }
  0x51   :  { %1679 = vmatpush1.bf16.msra.mxu0 %v2840_v39  ;;  %1843 = vmatpush1.bf16.msra.mxu1 %v2841_v40  ;;  %v2933_v39 = vld [vmem:[#allocation9 + $0x30c] ss:$16 sps:$4 sm:$0xff]   ;;  %v2928_v40 = vld [vmem:[#allocation9 + $0x300] ss:$16 sps:$4 sm:$0xff]  }
  0x52   :  { %1680 = vmatprep.subr.bf16.mxu0 %v2842_v41  ;;  %1844 = vmatprep.subr.bf16.mxu1 %v2844_v42  ;;  %v2931_v41 = vld [vmem:[#allocation9 + $0x308] ss:$16 sps:$4 sm:$0xff]   ;;  %v2936_v42 = vld [vmem:[#allocation9 + $0x324] ss:$16 sps:$4 sm:$0xff]  }
  0x55   :  { %1681 = vmatpush1.bf16.msra.mxu0 %v2846_v43  ;;  %1845 = vmatpush1.bf16.msra.mxu1 %v2847_v44  ;;  %v2939_v43 = vld [vmem:[#allocation9 + $0x32c] ss:$16 sps:$4 sm:$0xff]   ;;  %v2934_v44 = vld [vmem:[#allocation9 + $0x320] ss:$16 sps:$4 sm:$0xff]  }
  0x56   :  { %1682 = vmatprep.subr.bf16.mxu0 %v2848_v45  ;;  %1846 = vmatprep.subr.bf16.mxu1 %v2850_v46  ;;  %v2937_v45 = vld [vmem:[#allocation9 + $0x328] ss:$16 sps:$4 sm:$0xff]   ;;  %v2942_v46 = vld [vmem:[#allocation9 + $0x344] ss:$16 sps:$4 sm:$0xff]  }
  0x59   :  { %1683 = vmatpush1.bf16.msra.mxu0 %v2852_v48  ;;  %1847 = vmatpush1.bf16.msra.mxu1 %v2853_v50  ;;  %v2940_v48 = vld [vmem:[#allocation9 + $0x340] ss:$16 sps:$4 sm:$0xff]   ;;  %v2943_v50 = vld [vmem:[#allocation9 + $0x348] ss:$16 sps:$4 sm:$0xff]  }
  0x5a   :  { %1684 = vmatprep.subr.bf16.mxu0 %v2854_v51  ;;  %1848 = vmatprep.subr.bf16.mxu1 %v2856_v52  ;;  %v2948_v51 = vld [vmem:[#allocation9 + $0x364] ss:$16 sps:$4 sm:$0xff]   ;;  %v2951_v52 = vld [vmem:[#allocation9 + $0x36c] ss:$16 sps:$4 sm:$0xff]  }
  0x5d   :  { %1685 = vmatpush1.bf16.msra.mxu0 %v2858_v53  ;;  %1849 = vmatpush1.bf16.msra.mxu1 %v2859_v54  ;;  %v2946_v53 = vld [vmem:[#allocation9 + $0x360] ss:$16 sps:$4 sm:$0xff]   ;;  %v2949_v54 = vld [vmem:[#allocation9 + $0x368] ss:$16 sps:$4 sm:$0xff]  }
  0x5e   :  { %1686 = vmatprep.subr.bf16.mxu0 %v2860_v55  ;;  %1850 = vmatprep.subr.bf16.mxu1 %v2862_v56  ;;  %v2954_v55 = vld [vmem:[#allocation9 + $0x384] ss:$16 sps:$4 sm:$0xff]   ;;  %v2957_v56 = vld [vmem:[#allocation9 + $0x38c] ss:$16 sps:$4 sm:$0xff]  }
  0x61   :  { %1687 = vmatpush1.bf16.msra.mxu0 %v2864_v57  ;;  %1851 = vmatpush1.bf16.msra.mxu1 %v2865_v58  ;;  %v2952_v57 = vld [vmem:[#allocation9 + $0x380] ss:$16 sps:$4 sm:$0xff]   ;;  %v2955_v58 = vld [vmem:[#allocation9 + $0x388] ss:$16 sps:$4 sm:$0xff]  }
  0x62   :  { %1688 = vmatprep.subr.bf16.mxu0 %v2866_v59  ;;  %1852 = vmatprep.subr.bf16.mxu1 %v2868_v60  ;;  %v2960_v59 = vld [vmem:[#allocation9 + $0x3a4] ss:$16 sps:$4 sm:$0xff]   ;;  %v2963_v60 = vld [vmem:[#allocation9 + $0x3ac] ss:$16 sps:$4 sm:$0xff]  }
  0x65   :  { %1689 = vmatpush1.bf16.msra.mxu0 %v2870_v61  ;;  %1853 = vmatpush1.bf16.msra.mxu1 %v2871_v62  ;;  %v2958_v61 = vld [vmem:[#allocation9 + $0x3a0] ss:$16 sps:$4 sm:$0xff]   ;;  %v2961_v62 = vld [vmem:[#allocation9 + $0x3a8] ss:$16 sps:$4 sm:$0xff]  }
  0x66   :  { %1690 = vmatprep.subr.bf16.mxu0 %v2872_v63  ;;  %1854 = vmatprep.subr.bf16.mxu1 %v2874_v0  ;;  %v2966_v63 = vld [vmem:[#allocation9 + $0x3c4] ss:$16 sps:$4 sm:$0xff]   ;;  %v2969_v0 = vld [vmem:[#allocation9 + $0x3cc] ss:$16 sps:$4 sm:$0xff]  }
  0x69   :  { %1691 = vmatpush1.bf16.msra.mxu0 %v2876_v1  ;;  %1855 = vmatpush1.bf16.msra.mxu1 %v2877_v2  ;;  %v2964_v1 = vld [vmem:[#allocation9 + $0x3c0] ss:$16 sps:$4 sm:$0xff]   ;;  %v2967_v2 = vld [vmem:[#allocation9 + $0x3c8] ss:$16 sps:$4 sm:$0xff]  }
  0x6a   :  { %1701 = vmatprep.subr.bf16.mxu0 %v2881_v3  ;;  %1865 = vmatprep.subr.bf16.mxu1 %v2884_v4  ;;  %v2972_v3 = vld [vmem:[#allocation9 + $0x3e4] ss:$16 sps:$4 sm:$0xff]   ;;  %v2975_v4 = vld [vmem:[#allocation9 + $0x3ec] ss:$16 sps:$4 sm:$0xff]  }
  0x6c   :  { %1693 = vmatmul.mubr.bf16.vlgmr.msra.gmra.mrb[0].mxu0 %v3427_v6  ;;  %1857 = vmatmul.mubr.bf16.vlgmr.msra.gmra.mrb[0].mxu1 %v3427_v6 }
  0x6d   :  { %1702 = vmatpush1.bf16.msra.mxu0 %v2879_v5  ;;  %1866 = vmatpush1.bf16.msra.mxu1 %v2882_v7  ;;  %v2970_v5 = vld [vmem:[#allocation9 + $0x3e0] ss:$16 sps:$4 sm:$0xff]   ;;  %v2973_v7 = vld [vmem:[#allocation9 + $0x3e8] ss:$16 sps:$4 sm:$0xff]  }
  0x6e   :  { %1703 = vmatprep.subr.bf16.mxu0 %v2888_v8  ;;  %1867 = vmatprep.subr.bf16.mxu1 %v2891_v9  ;;  %v2980_v8 = vld [vmem:[#allocation9 + $0x404] ss:$16 sps:$4 sm:$0xff]   ;;  %v2983_v9 = vld [vmem:[#allocation9 + $0x40c] ss:$16 sps:$4 sm:$0xff]  }
  0x6f   :  { %1733 = vmatprep.mubr.bf16.mxu0 %v3435_v31  ;;  %1897 = vmatprep.mubr.bf16.mxu1 %v3435_v31 }
  0x71   :  { %1704 = vmatpush1.bf16.msra.mxu0 %v2886_v10  ;;  %1868 = vmatpush1.bf16.msra.mxu1 %v2889_v11  ;;  %v3441_v10 = vcombine.low %v3431_v30, %v3431_v30  ;;  %v2978_v11 = vld [vmem:[#allocation9 + $0x400] ss:$16 sps:$4 sm:$0xff]   ;;  %v3005_v30 = vld [vmem:[#allocation9 + $0x488] ss:$16 sps:$4 sm:$0xff]  }
  0x72   :  { %1705 = vmatprep.subr.bf16.mxu0 %v2894_v12  ;;  %1869 = vmatprep.subr.bf16.mxu1 %v2897_v13  ;;  %v2981_v12 = vld [vmem:[#allocation9 + $0x408] ss:$16 sps:$4 sm:$0xff]   ;;  %v2986_v13 = vld [vmem:[#allocation9 + $0x424] ss:$16 sps:$4 sm:$0xff]  }
  0x75   :  { %1706 = vmatpush1.bf16.msra.mxu0 %v2892_v14  ;;  %1870 = vmatpush1.bf16.msra.mxu1 %v2895_v15  ;;  %v3443_v14 = vld [vmem:[#allocation6 + $0x10] sm:$0xff]  ;;  %v2989_v15 = vld [vmem:[#allocation9 + $0x42c] ss:$16 sps:$4 sm:$0xff]  }
  0x76   :  { %1707 = vmatprep.subr.bf16.mxu0 %v2900_v16  ;;  %1871 = vmatprep.subr.bf16.mxu1 %v2903_v17  ;;  %v3447_v16 = vcombine.high %v3443_v14, %v3443_v14  ;;  %v2984_v17 = vld [vmem:[#allocation9 + $0x420] ss:$16 sps:$4 sm:$0xff]  }
  0x79   :  { %1708 = vmatpush1.bf16.msra.mxu0 %v2898_v18  ;;  %1872 = vmatpush1.bf16.msra.mxu1 %v2901_v19  ;;  %v2987_v18 = vld [vmem:[#allocation9 + $0x428] ss:$16 sps:$4 sm:$0xff]   ;;  %v2992_v19 = vld [vmem:[#allocation9 + $0x444] ss:$16 sps:$4 sm:$0xff]  }
  0x7a   :  { %1709 = vmatprep.subr.bf16.mxu0 %v2906_v20  ;;  %1873 = vmatprep.subr.bf16.mxu1 %v2909_v21  ;;  %v2995_v20 = vld [vmem:[#allocation9 + $0x44c] ss:$16 sps:$4 sm:$0xff]   ;;  %v2990_v21 = vld [vmem:[#allocation9 + $0x440] ss:$16 sps:$4 sm:$0xff]  }
  0x7d   :  { %1710 = vmatpush1.bf16.msra.mxu0 %v2904_v22  ;;  %1874 = vmatpush1.bf16.msra.mxu1 %v2907_v23  ;;  %v2993_v22 = vld [vmem:[#allocation9 + $0x448] ss:$16 sps:$4 sm:$0xff]   ;;  %v2998_v23 = vld [vmem:[#allocation9 + $0x464] ss:$16 sps:$4 sm:$0xff]  }
  0x7e   :  { %1711 = vmatprep.subr.bf16.mxu0 %v2912_v24  ;;  %1875 = vmatprep.subr.bf16.mxu1 %v2915_v25  ;;  %v3001_v24 = vld [vmem:[#allocation9 + $0x46c] ss:$16 sps:$4 sm:$0xff]   ;;  %v2996_v25 = vld [vmem:[#allocation9 + $0x460] ss:$16 sps:$4 sm:$0xff]  }
  0x81   :  { %1712 = vmatpush1.bf16.msra.mxu0 %v2910_v26  ;;  %1876 = vmatpush1.bf16.msra.mxu1 %v2913_v27  ;;  %v2999_v26 = vld [vmem:[#allocation9 + $0x468] ss:$16 sps:$4 sm:$0xff]   ;;  %v3004_v27 = vld [vmem:[#allocation9 + $0x484] ss:$16 sps:$4 sm:$0xff]  }
  0x82   :  { %1713 = vmatprep.subr.bf16.mxu0 %v2918_v28  ;;  %1877 = vmatprep.subr.bf16.mxu1 %v2921_v29  ;;  %v3007_v28 = vld [vmem:[#allocation9 + $0x48c] ss:$16 sps:$4 sm:$0xff]   ;;  %v3002_v29 = vld [vmem:[#allocation9 + $0x480] ss:$16 sps:$4 sm:$0xff]  }
  0x85   :  { %1714 = vmatpush1.bf16.msra.mxu0 %v2916_v32  ;;  %1878 = vmatpush1.bf16.msra.mxu1 %v2919_v33  ;;  %v3010_v32 = vld [vmem:[#allocation9 + $0x4a4] ss:$16 sps:$4 sm:$0xff]   ;;  %v3013_v33 = vld [vmem:[#allocation9 + $0x4ac] ss:$16 sps:$4 sm:$0xff]  }
  0x86   :  { %1715 = vmatprep.subr.bf16.mxu0 %v2924_v34  ;;  %1879 = vmatprep.subr.bf16.mxu1 %v2927_v35  ;;  %v3008_v34 = vld [vmem:[#allocation9 + $0x4a0] ss:$16 sps:$4 sm:$0xff]   ;;  %v3011_v35 = vld [vmem:[#allocation9 + $0x4a8] ss:$16 sps:$4 sm:$0xff]  }
  0x89   :  { %1716 = vmatpush1.bf16.msra.mxu0 %v2922_v36  ;;  %1880 = vmatpush1.bf16.msra.mxu1 %v2925_v37  ;;  %v3016_v36 = vld [vmem:[#allocation9 + $0x4c4] ss:$16 sps:$4 sm:$0xff]   ;;  %v3019_v37 = vld [vmem:[#allocation9 + $0x4cc] ss:$16 sps:$4 sm:$0xff]  }
  0x8a   :  { %1717 = vmatprep.subr.bf16.mxu0 %v2930_v38  ;;  %1881 = vmatprep.subr.bf16.mxu1 %v2933_v39  ;;  %v3014_v38 = vld [vmem:[#allocation9 + $0x4c0] ss:$16 sps:$4 sm:$0xff]   ;;  %v3017_v39 = vld [vmem:[#allocation9 + $0x4c8] ss:$16 sps:$4 sm:$0xff]  }
  0x8d   :  { %1718 = vmatpush1.bf16.msra.mxu0 %v2928_v40  ;;  %1882 = vmatpush1.bf16.msra.mxu1 %v2931_v41  ;;  %v3022_v40 = vld [vmem:[#allocation9 + $0x4e4] ss:$16 sps:$4 sm:$0xff]   ;;  %v3025_v41 = vld [vmem:[#allocation9 + $0x4ec] ss:$16 sps:$4 sm:$0xff]  }
  0x8e   :  { %1719 = vmatprep.subr.bf16.mxu0 %v2936_v42  ;;  %1883 = vmatprep.subr.bf16.mxu1 %v2939_v43  ;;  %v3020_v42 = vld [vmem:[#allocation9 + $0x4e0] ss:$16 sps:$4 sm:$0xff]   ;;  %v3023_v43 = vld [vmem:[#allocation9 + $0x4e8] ss:$16 sps:$4 sm:$0xff]  }
  0x91   :  { %1720 = vmatpush1.bf16.msra.mxu0 %v2934_v44  ;;  %1884 = vmatpush1.bf16.msra.mxu1 %v2937_v45  ;;  %v3028_v44 = vld [vmem:[#allocation9 + $0x504] ss:$16 sps:$4 sm:$0xff]   ;;  %v3031_v45 = vld [vmem:[#allocation9 + $0x50c] ss:$16 sps:$4 sm:$0xff]  }
  0x92   :  { %1721 = vmatprep.subr.bf16.mxu0 %v2942_v46  ;;  %1885 = vmatprep.subr.bf16.mxu1 %v2945_v47  ;;  %v3026_v46 = vld [vmem:[#allocation9 + $0x500] ss:$16 sps:$4 sm:$0xff]   ;;  %v3029_v47 = vld [vmem:[#allocation9 + $0x508] ss:$16 sps:$4 sm:$0xff]  }
  0x95   :  { %1722 = vmatpush1.bf16.msra.mxu0 %v2940_v48  ;;  %1886 = vmatpush1.bf16.msra.mxu1 %v2943_v50  ;;  %v3034_v48 = vld [vmem:[#allocation9 + $0x524] ss:$16 sps:$4 sm:$0xff]   ;;  %v3037_v50 = vld [vmem:[#allocation9 + $0x52c] ss:$16 sps:$4 sm:$0xff]  }
  0x96   :  { %1723 = vmatprep.subr.bf16.mxu0 %v2948_v51  ;;  %1887 = vmatprep.subr.bf16.mxu1 %v2951_v52  ;;  %v3032_v51 = vld [vmem:[#allocation9 + $0x520] ss:$16 sps:$4 sm:$0xff]   ;;  %v3035_v52 = vld [vmem:[#allocation9 + $0x528] ss:$16 sps:$4 sm:$0xff]  }
  0x99   :  { %1724 = vmatpush1.bf16.msra.mxu0 %v2946_v53  ;;  %1888 = vmatpush1.bf16.msra.mxu1 %v2949_v54  ;;  %v3040_v53 = vld [vmem:[#allocation9 + $0x544] ss:$16 sps:$4 sm:$0xff]   ;;  %v3043_v54 = vld [vmem:[#allocation9 + $0x54c] ss:$16 sps:$4 sm:$0xff]  }
  0x9a   :  { %1725 = vmatprep.subr.bf16.mxu0 %v2954_v55  ;;  %1889 = vmatprep.subr.bf16.mxu1 %v2957_v56  ;;  %v3038_v55 = vld [vmem:[#allocation9 + $0x540] ss:$16 sps:$4 sm:$0xff]   ;;  %v3041_v56 = vld [vmem:[#allocation9 + $0x548] ss:$16 sps:$4 sm:$0xff]  }
  0x9d   :  { %1726 = vmatpush1.bf16.msra.mxu0 %v2952_v57  ;;  %1890 = vmatpush1.bf16.msra.mxu1 %v2955_v58  ;;  %v3046_v57 = vld [vmem:[#allocation9 + $0x564] ss:$16 sps:$4 sm:$0xff]   ;;  %v3049_v58 = vld [vmem:[#allocation9 + $0x56c] ss:$16 sps:$4 sm:$0xff]  }
  0x9e   :  { %1727 = vmatprep.subr.bf16.mxu0 %v2960_v59  ;;  %1891 = vmatprep.subr.bf16.mxu1 %v2963_v60  ;;  %v3044_v59 = vld [vmem:[#allocation9 + $0x560] ss:$16 sps:$4 sm:$0xff]   ;;  %v3047_v60 = vld [vmem:[#allocation9 + $0x568] ss:$16 sps:$4 sm:$0xff]  }
  0xa1   :  { %1728 = vmatpush1.bf16.msra.mxu0 %v2958_v61  ;;  %1892 = vmatpush1.bf16.msra.mxu1 %v2961_v62  ;;  %v3052_v61 = vld [vmem:[#allocation9 + $0x584] ss:$16 sps:$4 sm:$0xff]   ;;  %v3055_v62 = vld [vmem:[#allocation9 + $0x58c] ss:$16 sps:$4 sm:$0xff]  }
  0xa2   :  { %1729 = vmatprep.subr.bf16.mxu0 %v2966_v63  ;;  %1893 = vmatprep.subr.bf16.mxu1 %v2969_v0  ;;  %v3050_v63 = vld [vmem:[#allocation9 + $0x580] ss:$16 sps:$4 sm:$0xff]   ;;  %v3053_v0 = vld [vmem:[#allocation9 + $0x588] ss:$16 sps:$4 sm:$0xff]  }
  0xa5   :  { %1730 = vmatpush1.bf16.msra.mxu0 %v2964_v1  ;;  %1894 = vmatpush1.bf16.msra.mxu1 %v2967_v2  ;;  %v3058_v1 = vld [vmem:[#allocation9 + $0x5a4] ss:$16 sps:$4 sm:$0xff]   ;;  %v3061_v2 = vld [vmem:[#allocation9 + $0x5ac] ss:$16 sps:$4 sm:$0xff]  }
  0xa6   :  { %1731 = vmatprep.subr.bf16.mxu0 %v2972_v3  ;;  %1895 = vmatprep.subr.bf16.mxu1 %v2975_v4  ;;  %v3056_v3 = vld [vmem:[#allocation9 + $0x5a0] ss:$16 sps:$4 sm:$0xff]   ;;  %v3059_v4 = vld [vmem:[#allocation9 + $0x5a8] ss:$16 sps:$4 sm:$0xff]  }
  0xa9   :  { %1732 = vmatpush1.bf16.msra.mxu0 %v2970_v5  ;;  %1896 = vmatpush1.bf16.msra.mxu1 %v2973_v7  ;;  %v3064_v5 = vld [vmem:[#allocation9 + $0x5c4] ss:$16 sps:$4 sm:$0xff]   ;;  %v3067_v7 = vld [vmem:[#allocation9 + $0x5cc] ss:$16 sps:$4 sm:$0xff]  }
  0xaa   :  { %1742 = vmatprep.subr.bf16.mxu0 %v2980_v8  ;;  %1906 = vmatprep.subr.bf16.mxu1 %v2983_v9  ;;  %v3062_v8 = vld [vmem:[#allocation9 + $0x5c0] ss:$16 sps:$4 sm:$0xff]   ;;  %v3065_v9 = vld [vmem:[#allocation9 + $0x5c8] ss:$16 sps:$4 sm:$0xff]  }
  0xac   :  { %1734 = vmatmul.mubr.bf16.vlgmr.msra.gmra.mrb[0].mxu0 %v3441_v10  ;;  %1898 = vmatmul.mubr.bf16.vlgmr.msra.gmra.mrb[0].mxu1 %v3441_v10 }
  0xad   :  { %1743 = vmatpush1.bf16.msra.mxu0 %v2978_v11  ;;  %1907 = vmatpush1.bf16.msra.mxu1 %v2981_v12  ;;  %v3070_v11 = vld [vmem:[#allocation9 + $0x5e4] ss:$16 sps:$4 sm:$0xff]   ;;  %v3073_v12 = vld [vmem:[#allocation9 + $0x5ec] ss:$16 sps:$4 sm:$0xff]  }
  0xae   :  { %1744 = vmatprep.subr.bf16.mxu0 %v2986_v13  ;;  %1908 = vmatprep.subr.bf16.mxu1 %v2989_v15  ;;  %v3068_v13 = vld [vmem:[#allocation9 + $0x5e0] ss:$16 sps:$4 sm:$0xff]   ;;  %v3071_v15 = vld [vmem:[#allocation9 + $0x5e8] ss:$16 sps:$4 sm:$0xff]  }
  0xaf   :  { %1774 = vmatprep.mubr.bf16.mxu0 %v3447_v16  ;;  %1938 = vmatprep.mubr.bf16.mxu1 %v3447_v16 }
  0xb1   :  { %1745 = vmatpush1.bf16.msra.mxu0 %v2984_v17  ;;  %1909 = vmatpush1.bf16.msra.mxu1 %v2987_v18  ;;  %v3078_v17 = vld [vmem:[#allocation9 + $0x604] ss:$16 sps:$4 sm:$0xff]   ;;  %v3081_v18 = vld [vmem:[#allocation9 + $0x60c] ss:$16 sps:$4 sm:$0xff]  }
  0xb2   :  { %1746 = vmatprep.subr.bf16.mxu0 %v2992_v19  ;;  %1910 = vmatprep.subr.bf16.mxu1 %v2995_v20  ;;  %v3455_v19 = vcombine.low %v3443_v14, %v3443_v14  ;;  %v3457_v20 = vld [vmem:[#allocation6 + $0x18] sm:$0xff]  ;;  %v3082_v14 = vld [vmem:[#allocation9 + $0x620] ss:$16 sps:$4 sm:$0xff]  }
  0xb5   :  { %1747 = vmatpush1.bf16.msra.mxu0 %v2990_v21  ;;  %1911 = vmatpush1.bf16.msra.mxu1 %v2993_v22  ;;  %v3076_v21 = vld [vmem:[#allocation9 + $0x600] ss:$16 sps:$4 sm:$0xff]   ;;  %v3079_v22 = vld [vmem:[#allocation9 + $0x608] ss:$16 sps:$4 sm:$0xff]  }
  0xb6   :  { %1748 = vmatprep.subr.bf16.mxu0 %v2998_v23  ;;  %1912 = vmatprep.subr.bf16.mxu1 %v3001_v24  ;;  %v3084_v23 = vld [vmem:[#allocation9 + $0x624] ss:$16 sps:$4 sm:$0xff]   ;;  %v3087_v24 = vld [vmem:[#allocation9 + $0x62c] ss:$16 sps:$4 sm:$0xff]  }
  0xb9   :  { %1749 = vmatpush1.bf16.msra.mxu0 %v2996_v25  ;;  %1913 = vmatpush1.bf16.msra.mxu1 %v2999_v26  ;;  %v3461_v25 = vcombine.high %v3457_v20, %v3457_v20  ;;  %v3085_v26 = vld [vmem:[#allocation9 + $0x628] ss:$16 sps:$4 sm:$0xff]  }
  0xba   :  { %1750 = vmatprep.subr.bf16.mxu0 %v3004_v27  ;;  %1914 = vmatprep.subr.bf16.mxu1 %v3007_v28  ;;  %v3090_v27 = vld [vmem:[#allocation9 + $0x644] ss:$16 sps:$4 sm:$0xff]   ;;  %v3093_v28 = vld [vmem:[#allocation9 + $0x64c] ss:$16 sps:$4 sm:$0xff]  }
  0xbd   :  { %1751 = vmatpush1.bf16.msra.mxu0 %v3002_v29  ;;  %1915 = vmatpush1.bf16.msra.mxu1 %v3005_v30  ;;  %v3088_v29 = vld [vmem:[#allocation9 + $0x640] ss:$16 sps:$4 sm:$0xff]   ;;  %v3091_v30 = vld [vmem:[#allocation9 + $0x648] ss:$16 sps:$4 sm:$0xff]  }
  0xbe   :  { %1752 = vmatprep.subr.bf16.mxu0 %v3010_v32  ;;  %1916 = vmatprep.subr.bf16.mxu1 %v3013_v33  ;;  %v3096_v32 = vld [vmem:[#allocation9 + $0x664] ss:$16 sps:$4 sm:$0xff]   ;;  %v3099_v33 = vld [vmem:[#allocation9 + $0x66c] ss:$16 sps:$4 sm:$0xff]  }
  0xc1   :  { %1753 = vmatpush1.bf16.msra.mxu0 %v3008_v34  ;;  %1917 = vmatpush1.bf16.msra.mxu1 %v3011_v35  ;;  %v3094_v34 = vld [vmem:[#allocation9 + $0x660] ss:$16 sps:$4 sm:$0xff]   ;;  %v3097_v35 = vld [vmem:[#allocation9 + $0x668] ss:$16 sps:$4 sm:$0xff]  }
  0xc2   :  { %1754 = vmatprep.subr.bf16.mxu0 %v3016_v36  ;;  %1918 = vmatprep.subr.bf16.mxu1 %v3019_v37  ;;  %v3102_v36 = vld [vmem:[#allocation9 + $0x684] ss:$16 sps:$4 sm:$0xff]   ;;  %v3105_v37 = vld [vmem:[#allocation9 + $0x68c] ss:$16 sps:$4 sm:$0xff]  }
  0xc5   :  { %1755 = vmatpush1.bf16.msra.mxu0 %v3014_v38  ;;  %1919 = vmatpush1.bf16.msra.mxu1 %v3017_v39  ;;  %v3100_v38 = vld [vmem:[#allocation9 + $0x680] ss:$16 sps:$4 sm:$0xff]   ;;  %v3103_v39 = vld [vmem:[#allocation9 + $0x688] ss:$16 sps:$4 sm:$0xff]  }
  0xc6   :  { %1756 = vmatprep.subr.bf16.mxu0 %v3022_v40  ;;  %1920 = vmatprep.subr.bf16.mxu1 %v3025_v41  ;;  %v3108_v40 = vld [vmem:[#allocation9 + $0x6a4] ss:$16 sps:$4 sm:$0xff]   ;;  %v3111_v41 = vld [vmem:[#allocation9 + $0x6ac] ss:$16 sps:$4 sm:$0xff]  }
  0xc9   :  { %1757 = vmatpush1.bf16.msra.mxu0 %v3020_v42  ;;  %1921 = vmatpush1.bf16.msra.mxu1 %v3023_v43  ;;  %v3106_v42 = vld [vmem:[#allocation9 + $0x6a0] ss:$16 sps:$4 sm:$0xff]   ;;  %v3109_v43 = vld [vmem:[#allocation9 + $0x6a8] ss:$16 sps:$4 sm:$0xff]  }
  0xca   :  { %1758 = vmatprep.subr.bf16.mxu0 %v3028_v44  ;;  %1922 = vmatprep.subr.bf16.mxu1 %v3031_v45  ;;  %v3114_v44 = vld [vmem:[#allocation9 + $0x6c4] ss:$16 sps:$4 sm:$0xff]   ;;  %v3117_v45 = vld [vmem:[#allocation9 + $0x6cc] ss:$16 sps:$4 sm:$0xff]  }
  0xcd   :  { %1759 = vmatpush1.bf16.msra.mxu0 %v3026_v46  ;;  %1923 = vmatpush1.bf16.msra.mxu1 %v3029_v47  ;;  %v3112_v46 = vld [vmem:[#allocation9 + $0x6c0] ss:$16 sps:$4 sm:$0xff]   ;;  %v3115_v47 = vld [vmem:[#allocation9 + $0x6c8] ss:$16 sps:$4 sm:$0xff]  }
  0xce   :  { %1760 = vmatprep.subr.bf16.mxu0 %v3034_v48  ;;  %1924 = vmatprep.subr.bf16.mxu1 %v3037_v50  ;;  %v3120_v48 = vld [vmem:[#allocation9 + $0x6e4] ss:$16 sps:$4 sm:$0xff]   ;;  %v3123_v50 = vld [vmem:[#allocation9 + $0x6ec] ss:$16 sps:$4 sm:$0xff]  }
  0xd1   :  { %1761 = vmatpush1.bf16.msra.mxu0 %v3032_v51  ;;  %1925 = vmatpush1.bf16.msra.mxu1 %v3035_v52  ;;  %v3118_v51 = vld [vmem:[#allocation9 + $0x6e0] ss:$16 sps:$4 sm:$0xff]   ;;  %v3121_v52 = vld [vmem:[#allocation9 + $0x6e8] ss:$16 sps:$4 sm:$0xff]  }
  0xd2   :  { %1762 = vmatprep.subr.bf16.mxu0 %v3040_v53  ;;  %1926 = vmatprep.subr.bf16.mxu1 %v3043_v54  ;;  %v3126_v53 = vld [vmem:[#allocation9 + $0x704] ss:$16 sps:$4 sm:$0xff]   ;;  %v3129_v54 = vld [vmem:[#allocation9 + $0x70c] ss:$16 sps:$4 sm:$0xff]  }
  0xd5   :  { %1763 = vmatpush1.bf16.msra.mxu0 %v3038_v55  ;;  %1927 = vmatpush1.bf16.msra.mxu1 %v3041_v56  ;;  %v3124_v55 = vld [vmem:[#allocation9 + $0x700] ss:$16 sps:$4 sm:$0xff]   ;;  %v3127_v56 = vld [vmem:[#allocation9 + $0x708] ss:$16 sps:$4 sm:$0xff]  }
  0xd6   :  { %1764 = vmatprep.subr.bf16.mxu0 %v3046_v57  ;;  %1928 = vmatprep.subr.bf16.mxu1 %v3049_v58  ;;  %v3132_v57 = vld [vmem:[#allocation9 + $0x724] ss:$16 sps:$4 sm:$0xff]   ;;  %v3135_v58 = vld [vmem:[#allocation9 + $0x72c] ss:$16 sps:$4 sm:$0xff]  }
  0xd9   :  { %1765 = vmatpush1.bf16.msra.mxu0 %v3044_v59  ;;  %1929 = vmatpush1.bf16.msra.mxu1 %v3047_v60  ;;  %v3130_v59 = vld [vmem:[#allocation9 + $0x720] ss:$16 sps:$4 sm:$0xff]   ;;  %v3133_v60 = vld [vmem:[#allocation9 + $0x728] ss:$16 sps:$4 sm:$0xff]  }
  0xda   :  { %1766 = vmatprep.subr.bf16.mxu0 %v3052_v61  ;;  %1930 = vmatprep.subr.bf16.mxu1 %v3055_v62  ;;  %v3138_v61 = vld [vmem:[#allocation9 + $0x744] ss:$16 sps:$4 sm:$0xff]   ;;  %v3141_v62 = vld [vmem:[#allocation9 + $0x74c] ss:$16 sps:$4 sm:$0xff]  }
  0xdd   :  { %1767 = vmatpush1.bf16.msra.mxu0 %v3050_v63  ;;  %1931 = vmatpush1.bf16.msra.mxu1 %v3053_v0  ;;  %v3136_v63 = vld [vmem:[#allocation9 + $0x740] ss:$16 sps:$4 sm:$0xff]   ;;  %v3139_v0 = vld [vmem:[#allocation9 + $0x748] ss:$16 sps:$4 sm:$0xff]  }
  0xde   :  { %1768 = vmatprep.subr.bf16.mxu0 %v3058_v1  ;;  %1932 = vmatprep.subr.bf16.mxu1 %v3061_v2  ;;  %v3144_v1 = vld [vmem:[#allocation9 + $0x764] ss:$16 sps:$4 sm:$0xff]   ;;  %v3147_v2 = vld [vmem:[#allocation9 + $0x76c] ss:$16 sps:$4 sm:$0xff]  }
  0xe1   :  { %1769 = vmatpush1.bf16.msra.mxu0 %v3056_v3  ;;  %1933 = vmatpush1.bf16.msra.mxu1 %v3059_v4  ;;  %v3142_v3 = vld [vmem:[#allocation9 + $0x760] ss:$16 sps:$4 sm:$0xff]   ;;  %v3145_v4 = vld [vmem:[#allocation9 + $0x768] ss:$16 sps:$4 sm:$0xff]  }
  0xe2   :  { %1770 = vmatprep.subr.bf16.mxu0 %v3064_v5  ;;  %1934 = vmatprep.subr.bf16.mxu1 %v3067_v7  ;;  %v3150_v5 = vld [vmem:[#allocation9 + $0x784] ss:$16 sps:$4 sm:$0xff]   ;;  %v3153_v7 = vld [vmem:[#allocation9 + $0x78c] ss:$16 sps:$4 sm:$0xff]  }
  0xe5   :  { %1771 = vmatpush1.bf16.msra.mxu0 %v3062_v8  ;;  %1935 = vmatpush1.bf16.msra.mxu1 %v3065_v9  ;;  %v3148_v8 = vld [vmem:[#allocation9 + $0x780] ss:$16 sps:$4 sm:$0xff]   ;;  %v3151_v9 = vld [vmem:[#allocation9 + $0x788] ss:$16 sps:$4 sm:$0xff]  }
  0xe6   :  { %1772 = vmatprep.subr.bf16.mxu0 %v3070_v11  ;;  %1936 = vmatprep.subr.bf16.mxu1 %v3073_v12  ;;  %v3156_v11 = vld [vmem:[#allocation9 + $0x7a4] ss:$16 sps:$4 sm:$0xff]   ;;  %v3159_v12 = vld [vmem:[#allocation9 + $0x7ac] ss:$16 sps:$4 sm:$0xff]  }
  0xe9   :  { %1773 = vmatpush1.bf16.msra.mxu0 %v3068_v13  ;;  %1937 = vmatpush1.bf16.msra.mxu1 %v3071_v15  ;;  %v3154_v13 = vld [vmem:[#allocation9 + $0x7a0] ss:$16 sps:$4 sm:$0xff]   ;;  %v3157_v15 = vld [vmem:[#allocation9 + $0x7a8] ss:$16 sps:$4 sm:$0xff]  }
  0xea   :  { %1783 = vmatprep.subr.bf16.mxu0 %v3078_v17  ;;  %1947 = vmatprep.subr.bf16.mxu1 %v3081_v18  ;;  %v3162_v17 = vld [vmem:[#allocation9 + $0x7c4] ss:$16 sps:$4 sm:$0xff]   ;;  %v3165_v18 = vld [vmem:[#allocation9 + $0x7cc] ss:$16 sps:$4 sm:$0xff]  }
  0xec   :  { %1775 = vmatmul.mubr.bf16.vlgmr.msra.gmra.mrb[0].mxu0 %v3455_v19  ;;  %1939 = vmatmul.mubr.bf16.vlgmr.msra.gmra.mrb[0].mxu1 %v3455_v19 }
  0xed   :  { %1784 = vmatpush1.bf16.msra.mxu0 %v3076_v21  ;;  %1948 = vmatpush1.bf16.msra.mxu1 %v3079_v22  ;;  %v3160_v21 = vld [vmem:[#allocation9 + $0x7c0] ss:$16 sps:$4 sm:$0xff]   ;;  %v3163_v22 = vld [vmem:[#allocation9 + $0x7c8] ss:$16 sps:$4 sm:$0xff]  }
  0xee   :  { %1785 = vmatprep.subr.bf16.mxu0 %v3084_v23  ;;  %1949 = vmatprep.subr.bf16.mxu1 %v3087_v24  ;;  %v3168_v23 = vld [vmem:[#allocation9 + $0x7e4] ss:$16 sps:$4 sm:$0xff]   ;;  %v3171_v24 = vld [vmem:[#allocation9 + $0x7ec] ss:$16 sps:$4 sm:$0xff]  }
  0xef   :  { %1815 = vmatprep.mubr.bf16.mxu0 %v3461_v25  ;;  %1979 = vmatprep.mubr.bf16.mxu1 %v3461_v25 }
  0xf1   :  { %1786 = vmatpush1.bf16.msra.mxu0 %v3082_v14  ;;  %1950 = vmatpush1.bf16.msra.mxu1 %v3085_v26  ;;  %v3166_v14 = vld [vmem:[#allocation9 + $0x7e0] ss:$16 sps:$4 sm:$0xff]   ;;  %v3169_v26 = vld [vmem:[#allocation9 + $0x7e8] ss:$16 sps:$4 sm:$0xff]  }
  0xf2   :  { %1787 = vmatprep.subr.bf16.mxu0 %v3090_v27  ;;  %1951 = vmatprep.subr.bf16.mxu1 %v3093_v28  ;;  %v3469_v27 = vcombine.low %v3457_v20, %v3457_v20  ;;  %v332_v28 = vlaneseq }
  0xf5   :  { %1788 = vmatpush1.bf16.msra.mxu0 %v3088_v29  ;;  %1952 = vmatpush1.bf16.msra.mxu1 %v3091_v30  ;;  %v3336_v29 = vmov 1966171168  }
  0xf6   :  { %1789 = vmatprep.subr.bf16.mxu0 %v3096_v32  ;;  %1953 = vmatprep.subr.bf16.mxu1 %v3099_v33  ;;  %v2027_v30 = vunpack.c.l.s4 %v3336_v29  ;;  %v333_v32 = vshrl.u32 %v332_v28, 7  ;;  %v2731_v33 = vld.sshfl [vmem:[%s3577_s3] sm:$0x11 pattern:$0x75316420]  ;;  %v3339_v28 = vmov 0.0  }
  0xf7   :  { %68 = vst.msk [vmem:[#allocation3] sm:$0x1] %vm66_vm0, %v3339_v28 }
  0xf9   :  { %1790 = vmatpush1.bf16.msra.mxu0 %v3094_v34  ;;  %1954 = vmatpush1.bf16.msra.mxu1 %v3097_v35  ;;  %v2028_v34 = vunpack.c.0.s8 %v2027_v30  ;;  %v2025_v35 = vcombine.high %v2731_v33, %v2731_v33 }
  0xfa   :  { %1791 = vmatprep.subr.bf16.mxu0 %v3102_v36  ;;  %1955 = vmatprep.subr.bf16.mxu1 %v3105_v37  ;;  %v2007_v37 = vld [vmem:[#allocation5] sm:$0x1] }
  0xfb   :  { %v3476_v36 = vsub.s32 %v2028_v34, %v333_v32 }
  0xfd   :  { %1792 = vmatpush1.bf16.msra.mxu0 %v3100_v38  ;;  %1956 = vmatpush1.bf16.msra.mxu1 %v3103_v39  ;;  %v2039_v20 = vrot.slane %v2025_v35, %v3476_v36  ;;  %v3337_v38 = vmov 0   ;;  %v342_v39 = vsub.s32 2, %v333_v32 }
  0xfe   :  { %1793 = vmatprep.subr.bf16.mxu0 %v3108_v40  ;;  %1957 = vmatprep.subr.bf16.mxu1 %v3111_v41  ;;  %v330_v40 = vld [vmem:[%s3576_s2] sm:$0xf]  ;;  %v346_v41 = vsub.s32 3, %v333_v32  ;;  %s3340_s2 = smov [#allocation12]  }
  0xff   :  { %2780 = vset.pattern.permute.xlu0 %v3337_v38  ;;  %2781 = vset.pattern.permute.xlu1 %v3337_v38  ;;  %s2424_s3 = sshll.u32 %s3340_s2, 4  ;;  %s2425_s3 = int_to_ptr.vmem [resolvable:$true] %s2424_s3 }
 0x100   :  { %2010 = vperm.xlu0 %2780, %v2007_v37   ;;  %v2125_v37 = vsel %vm2117_vm2, %v3441_v10, 0  ;;  %s3234_s14 = scalar_lea.vmem %s2425_s3, 16  ;;  %s3238_s15 = scalar_lea.vmem %s2425_s3, 32 }
 0x101   :  { %1794 = vmatpush1.bf16.msra.mxu0 %v3106_v42  ;;  %1958 = vmatpush1.bf16.msra.mxu1 %v3109_v43  ;;  %v343_v42 = vrot.slane %v330_v40, %v342_v39  ;;  %v347_v43 = vrot.slane %v330_v40, %v346_v41  ;;  %p3235_p2 = scmp.ne.s32.totalorder %s2425_s3, %s3234_s14  ;;  %p3239_p3 = scmp.lt.s32.totalorder %s2425_s3, %s2425_s3 }
 0x102   :  { %1795 = vmatprep.subr.bf16.mxu0 %v3114_v44  ;;  %1959 = vmatprep.subr.bf16.mxu1 %v3117_v45  ;;  %p3240_p4 = scmp.lt.s32.totalorder %s3238_s15, %s3234_s14 }
 0x104   :  { %p3241_p5 = por %p3240_p4, %p3239_p3 }
 0x105   :  { %1796 = vmatpush1.bf16.msra.mxu0 %v3112_v46  ;;  %1960 = vmatpush1.bf16.msra.mxu1 %v3115_v47 }
 0x106   :  { %1797 = vmatprep.subr.bf16.mxu0 %v3120_v48  ;;  %1961 = vmatprep.subr.bf16.mxu1 %v3123_v50  ;;  %p3242_p6 = pnand %p3241_p5, %p3235_p2 }
 0x109   :  { %1798 = vmatpush1.bf16.msra.mxu0 %v3118_v51  ;;  %1962 = vmatpush1.bf16.msra.mxu1 %v3121_v52 }
 0x10a   :  { %1799 = vmatprep.subr.bf16.mxu0 %v3126_v53  ;;  %1963 = vmatprep.subr.bf16.mxu1 %v3129_v54 }
 0x10d   :  { %1800 = vmatpush1.bf16.msra.mxu0 %v3124_v55  ;;  %1964 = vmatpush1.bf16.msra.mxu1 %v3127_v56  ;;  %v3485_v56 = vsub.s32 0, %v333_v32 }
 0x10e   :  { %1801 = vmatprep.subr.bf16.mxu0 %v3132_v57  ;;  %1965 = vmatprep.subr.bf16.mxu1 %v3135_v58  ;;  %v338_v58 = vsub.s32 1, %v333_v32 }
 0x111   :  { %1802 = vmatpush1.bf16.msra.mxu0 %v3130_v59  ;;  %1966 = vmatpush1.bf16.msra.mxu1 %v3133_v60  ;;  %v335_v59 = vrot.slane %v330_v40, %v3485_v56  ;;  %v339_v60 = vrot.slane %v330_v40, %v338_v58 }
 0x112   :  { %1803 = vmatprep.subr.bf16.mxu0 %v3138_v61  ;;  %1967 = vmatprep.subr.bf16.mxu1 %v3141_v62 }
 0x115   :  { %1804 = vmatpush1.bf16.msra.mxu0 %v3136_v63  ;;  %1968 = vmatpush1.bf16.msra.mxu1 %v3139_v0 }
 0x116   :  { %1805 = vmatprep.subr.bf16.mxu0 %v3144_v1  ;;  %1969 = vmatprep.subr.bf16.mxu1 %v3147_v2 }
 0x119   :  { %1806 = vmatpush1.bf16.msra.mxu0 %v3142_v3  ;;  %1970 = vmatpush1.bf16.msra.mxu1 %v3145_v4 }
 0x11a   :  { %1807 = vmatprep.subr.bf16.mxu0 %v3150_v5  ;;  %1971 = vmatprep.subr.bf16.mxu1 %v3153_v7 }
 0x11d   :  { %1808 = vmatpush1.bf16.msra.mxu0 %v3148_v8  ;;  %1972 = vmatpush1.bf16.msra.mxu1 %v3151_v9 }
 0x11e   :  { %1809 = vmatprep.subr.bf16.mxu0 %v3156_v11  ;;  %1973 = vmatprep.subr.bf16.mxu1 %v3159_v12 }
 0x121   :  { %1810 = vmatpush1.bf16.msra.mxu0 %v3154_v13  ;;  %1974 = vmatpush1.bf16.msra.mxu1 %v3157_v15  ;;  %v2032_v13 = vrot.slane %v2731_v33, %v3476_v36  ;;  %v3338_v15 = vmov -1e+30  }
 0x122   :  { %1811 = vmatprep.subr.bf16.mxu0 %v3162_v17  ;;  %1975 = vmatprep.subr.bf16.mxu1 %v3165_v18  ;;  %67 = vst.msk [vmem:[#allocation2] sm:$0x1] %vm66_vm0, %v3338_v15 }
 0x125   :  { %1812 = vmatpush1.bf16.msra.mxu0 %v3160_v21  ;;  %1976 = vmatpush1.bf16.msra.mxu1 %v3163_v22 }
 0x126   :  { %1813 = vmatprep.subr.bf16.mxu0 %v3168_v23  ;;  %1977 = vmatprep.subr.bf16.mxu1 %v3171_v24 }
 0x129   :  { %1814 = vmatpush1.bf16.msra.mxu0 %v3166_v14  ;;  %1978 = vmatpush1.bf16.msra.mxu1 %v3169_v26  ;;  %v2084_v29 = vld [vmem:[#allocation2] sm:$0x1] }
 0x12a   :  { %2732 = vmatprep.subr.msk.bf16.mxu1 %vm2117_vm2, %v3423_v49 }
 0x12c   :  { %1816 = vmatmul.mubr.bf16.vlgmr.msra.gmra.mrb[0].mxu0 %v3469_v27  ;;  %1980 = vmatmul.mubr.bf16.vlgmr.msra.gmra.mrb[0].mxu1 %v3469_v27 }
 0x12d   :  { %2074 = vmatprep.mubr.bf16.mxu0 %v2039_v20  ;;  %2174 = vmatprep.mubr.bf16.mxu1 %v3337_v38  ;;  %v2119_v20 = vsel %vm2117_vm2, %v3427_v6, 0 }
 0x12e   :  { %2143 = vmatpush1.bf16.msra.mxu1 %v2119_v20 }
 0x12f   :  { %2736 = vmatprep.subr.msk.bf16.mxu1 %vm2117_vm2, %v3447_v16  ;;  %v2137_v16 = vsel %vm2117_vm2, %v3469_v27, 0 }
 0x17f   :  { %v2011_v17 = vpop.permute.xlu0 %2010 }
 0x180   :  { %v2016_v18 = vrot.slane %v2011_v17, %v3485_v56 }
 0x1ff   :  { %v1817_v44 = vpop.f32.mrb[0].mxu0  ;;  %v1981_v45 = vpop.f32.mrb[0].mxu1 }
 0x200   :  { %v2742_v46 = vadd.f32 %v1981_v45, %v343_v42  ;;  %v1819_v47 = vpop.f32.mrb[1].mxu0  ;;  %v1983_v48 = vpop.f32.mrb[1].mxu1  ;;  %v2740_v61 = vadd.f32 %v1817_v44, %v335_v59 }
 0x201   :  { %v2743_v50 = vadd.f32 %v1983_v48, %v347_v43  ;;  %v1821_v51 = vpop.f32.mrb[2].mxu0  ;;  %v1985_v52 = vpop.f32.mrb[2].mxu1  ;;  %v2741_v62 = vadd.f32 %v1819_v47, %v339_v60  ;;  %v2104_v43 = vld [vmem:[#allocation3] sm:$0x1] }
 0x202   :  { %v2729_v53 = vmul.f32 -1.442695, %v2742_v46  ;;  %v1822_v54 = vpop.f32.mrb[3].mxu0  ;;  %v1986_v55 = vpop.f32.mrb[3].mxu1 }
 0x203   :  { %v2730_v57 = vmul.f32 -1.442695, %v2743_v50 }
 0x204   :  { %3174 = vpow2.f32 %v2729_v53 }
 0x205   :  { %3176 = vpow2.f32 %v2730_v57 }
 0x206   :  { %3178 = vtanh.f32 %v2740_v61 }
 0x207   :  { %3180 = vtanh.f32 %v2741_v62 }
 0x20e   :  { %v3175_v63 = vpop.eup %3174 }
 0x20f   :  { %v3177_v0 = vpop.eup %3176  ;;  %v1996_v1 = vadd.f32 1.0, %v3175_v63 }
 0x210   :  { %v1997_v2 = vadd.f32 1.0, %v3177_v0  ;;  %v3179_v3 = vpop.eup %3178 }
 0x211   :  { %3182 = vrcp.f32 %v1996_v1  ;;  %v3181_v4 = vpop.eup %3180 }
 0x212   :  { %3184 = vrcp.f32 %v1997_v2 }
 0x21b   :  { %v3183_v5 = vpop.eup %3182 }
 0x21c   :  { %v3185_v7 = vpop.eup %3184  ;;  %v2002_v8 = vmul.f32 %v3183_v5, %v3179_v3 }
 0x21d   :  { %v2003_v9 = vmul.f32 %v3185_v7, %v3181_v4 }
 0x21e   :  { %v2004_v12 = vpack.c.bf16 %v2002_v8, %v2002_v8 }
 0x21f   :  { %v2005_v11 = vpack.c.bf16 %v2003_v9, %v2003_v9 }
 0x221   :  { %2042 = vmatprep.subr.bf16.mxu0 %v2005_v11 }
 0x222   :  { %2043 = vmatpush1.bf16.xpose.msra.mxu0 %v2004_v12 }
 0x223   :  { %2734 = vmatprep.subr.msk.bf16.mxu0 %vm2117_vm2, %v3435_v31  ;;  %v2131_v31 = vsel %vm2117_vm2, %v3455_v19, 0 }
 0x229   :  { %2075 = vmatmul.mubr.bf16.vlgmr.msra.gmra.mrb[4].mxu0 %v2032_v13 }
 0x22a   :  { %2215 = vmatprep.mubr.bf16.mxu0 %v3337_v38  ;;  %2184 = vmatpush1.bf16.msra.mxu0 %v2125_v37 }
 0x22b   :  { %2738 = vmatprep.subr.msk.bf16.mxu0 %vm2117_vm2, %v3461_v25 }
 0x2fc   :  { %v2076_v21 = vpop.f32.mrb[4].mxu0 }
 0x2fd   :  { %v2077_v22 = vadd.f32 %v2076_v21, %v2016_v18  ;;  %v2078_v23 = vpop.f32.mrb[5].mxu0 }
 0x2fe   :  { %v2079_v24 = vpop.f32.mrb[6].mxu0 }
 0x2ff   :  { %v2080_v14 = vpop.f32.mrb[7].mxu0  ;;  %v2085_v26 = vsel %vm2082_vm1, %v2077_v22, -inf  ;;  %2083 = vst.msk [vmem:[#allocation11] sm:$0x1] %vm2082_vm1, %v2077_v22 }
 0x300   :  { %2086 = vmax.xlane.f32.xlu0 %v2085_v26 }
 0x38d   :  { %v2087_v30 = vpop.xlane.xlu0 %2086 }
 0x38e   :  { %v2088_v32 = vmax.f32 %v2084_v29, %v2087_v30 }
 0x390   :  { %v2089_v33 = vsub.f32 %v2084_v29, %v2088_v32  ;;  %2377 = vst.msk [vmem:[#allocation2] sm:$0x1] %vm66_vm0, %v2088_v32  ;;  %2094 = vperm.xlu1 %2781, %v2088_v32  }
 0x392   :  { %v2090_v34 = vmul.f32 1.442695, %v2089_v33 }
 0x394   :  { %3186 = vpow2.f32 %v2090_v34 }
 0x397   :  { %v2381_v25 = vld [vmem:[#allocation2] sm:$0x1] }
 0x39e   :  { %v3187_v35 = vpop.eup %3186 }
 0x39f   :  { %2309 = vperm.xlu0 %2780, %v3187_v35   ;;  %v2105_v44 = vmul.f32 %v3187_v35, %v2104_v43 }
 0x40f   :  { %v2095_v39 = vpop.permute.xlu1 %2094 }
 0x410   :  { %v2100_v49 = vrot.slane %v2095_v39, %v3485_v56 }
 0x412   :  { %v2101_v40 = vsub.f32 %v2077_v22, %v2100_v49 }
 0x414   :  { %v2102_v41 = vmul.f32 1.442695, %v2101_v40 }
 0x416   :  { %3188 = vpow2.f32 %v2102_v41 }
 0x420   :  { %v3189_v6 = vpop.eup %3188 }
 0x421   :  { %v2106_v10 = vsel %vm2082_vm1, %v3189_v6, 0.0  ;;  %v2112_v42 = vpack.c.bf16 %v3189_v6, %v3189_v6 }
 0x422   :  { %2107 = vadd.xlane.f32.xlu1 %v2106_v10 }
 0x423   :  { %2733 = vmatmul.mubr.msk.bf16.vlgmr.msra.gmra.mrb[4].mxu1 %vm2113_vm3, %v2112_v42  ;;  %2735 = vmatmul.mubr.msk.bf16.vlgmr.msra.gmra.mrb[8].mxu0 %vm2113_vm3, %v2112_v42 }
 0x424   :  { %2225 = vmatpush1.bf16.msra.mxu1 %v2131_v31  ;;  %2266 = vmatpush1.bf16.msra.mxu0 %v2137_v16 }
 0x425   :  { %2256 = vmatprep.mubr.bf16.mxu1 %v3337_v38  ;;  %2297 = vmatprep.mubr.bf16.mxu0 %v3337_v38 }
 0x42b   :  { %2737 = vmatmul.mubr.msk.bf16.vlgmr.msra.gmra.mrb[8].mxu1 %vm2113_vm3, %v2112_v42  ;;  %2739 = vmatmul.mubr.msk.bf16.vlgmr.msra.gmra.mrb[12].mxu0 %vm2113_vm3, %v2112_v42 }
 0x433   :  { %2384 = vperm.xlu1 %2781, %v2381_v25  }
 0x4af   :  { %v2108_v45 = vpop.xlane.xlu1 %2107 }
 0x4b0   :  { %v2109_v19 = vadd.f32 %v2108_v45, %v2105_v44 }
 0x4b2   :  { %2111 = vst.msk [vmem:[#allocation3] sm:$0x1] %vm66_vm0, %v2109_v19 }
 0x4b3   :  { %v2385_v27 = vpop.permute.xlu1 %2384 }
 0x4b4   :  { %v2390_v46 = vrot.slane %v2385_v27, %v3485_v56 }
 0x4b6   :  { %2391 = vst [vmem:[#allocation12] sm:$0x1] %v2390_v46 }
 0x4b9   :  { %v2392_v47 = vld [vmem:[#allocation3] sm:$0x1] }
 0x4ba   :  { %2395 = vperm.xlu0 %2780, %v2392_v47  }
 0x4bb   :  { %3245 = shalt.err (!%p3242_p6)
}
 0x4bc   :  { %s3246_s17 = scalar_lea.hbm %s3580_s6, 16 }
 0x4bd   :  { %p3247_p7 = scmp.ne.s32.totalorder %s3580_s6, %s3246_s17  ;;  %p3250_p8 = scmp.lt.u32.totalorder %s3246_s17, %s3580_s6 }
 0x4bf   :  { %p3252_p9 = pnand %p3250_p8, %p3247_p7 }
 0x4c1   :  { %3255 = shalt.err (!%p3252_p9)
}
 0x4c2   :  { %2427 = dma.vmem_to_hbm [thread:$0]  %s2425_s3, 16, %s3580_s6, [#allocation13]  }
 0x4c3   :  { %s3256_s24 = scalar_lea.vmem %s2415_s13, 16  ;;  %s3260_s25 = scalar_lea.vmem %s2415_s13, 32 }
 0x4c4   :  { %p3257_p10 = scmp.ne.s32.totalorder %s2415_s13, %s3256_s24  ;;  %p3261_p11 = scmp.lt.s32.totalorder %s2415_s13, %s2415_s13 }
 0x4c5   :  { %p3262_p12 = scmp.lt.s32.totalorder %s3260_s25, %s3256_s24 }
 0x4c7   :  { %p3263_p13 = por %p3262_p12, %p3261_p11 }
 0x4c9   :  { %p3264_p0 = pnand %p3263_p13, %p3257_p10 }
 0x4cb   :  { %3267 = shalt.err (!%p3264_p0)
}
 0x4cc   :  { %s3268_s0 = scalar_lea.hbm %s3579_s5, 16 }
 0x4cd   :  { %p3269_p1 = scmp.ne.s32.totalorder %s3579_s5, %s3268_s0  ;;  %p3272_p2 = scmp.lt.u32.totalorder %s3268_s0, %s3579_s5 }
 0x4cf   :  { %p3274_p3 = pnand %p3272_p2, %p3269_p1 }
 0x4d1   :  { %3277 = shalt.err (!%p3274_p3)
}
 0x4d2   :  { %2417 = dma.vmem_to_hbm [thread:$0]  %s2415_s13, 16, %s3579_s5, [#allocation8]   ;;  %v2310_v62 = vpop.permute.xlu0 %2309 }
 0x4d3   :  { %v2315_v13 = vrot.slane %v2310_v62, %v3485_v56  ;;  %s3342_s5 = smov [#allocation15]  }
 0x4d4   :  { %s2444_s10 = sshll.u32 %s3342_s5, 4  ;;  %s2445_s10 = int_to_ptr.vmem [resolvable:$true] %s2444_s10 }
 0x4d5   :  { %v2316_v21 = vmul.f32 0.0, %v2315_v13  ;;  %s3278_s11 = scalar_lea.vmem %s2445_s10, 128  ;;  %p3283_p5 = scmp.lt.s32.totalorder %s2445_s10, %s2445_s10 }
 0x4d6   :  { %p3279_p4 = scmp.ne.s32.totalorder %s2445_s10, %s3278_s11  ;;  %p3284_p6 = scmp.lt.s32.totalorder %s3278_s11, %s3278_s11 }
 0x4d8   :  { %p3285_p7 = por %p3284_p6, %p3283_p5 }
 0x4da   :  { %p3286_p8 = pnand %p3285_p7, %p3279_p4 }
 0x4f6   :  { %v2176_v38 = vpop.f32.mrb[4].mxu1  ;;  %v2217_v48 = vpop.f32.mrb[8].mxu0 }
 0x4f7   :  { %v2178_v50 = vpop.f32.mrb[5].mxu1  ;;  %v2219_v51 = vpop.f32.mrb[9].mxu0 }
 0x4f8   :  { %v2325_v52 = vcombine.low %v2176_v38, %v2178_v50  ;;  %v2326_v53 = vcombine.low %v2217_v48, %v2219_v51  ;;  %v2180_v54 = vpop.f32.mrb[6].mxu1  ;;  %v2221_v55 = vpop.f32.mrb[10].mxu0 }
 0x4f9   :  { %v2181_v57 = vpop.f32.mrb[7].mxu1  ;;  %v2222_v58 = vpop.f32.mrb[11].mxu0 }
 0x4fa   :  { %v2335_v59 = vrot.slane %v2325_v52, %v3476_v36  ;;  %v2342_v60 = vrot.slane %v2326_v53, %v3476_v36 }
 0x4fc   :  { %v2357_v61 = vcombine.low %v2335_v59, %v2342_v60 }
 0x4fe   :  { %v2258_v63 = vpop.f32.mrb[8].mxu1  ;;  %v2299_v0 = vpop.f32.mrb[12].mxu0  ;;  %v2365_v17 = vrot.slane %v2357_v61, %v3476_v36 }
 0x4ff   :  { %v2260_v1 = vpop.f32.mrb[9].mxu1  ;;  %v2301_v2 = vpop.f32.mrb[13].mxu0 }
 0x500   :  { %v2327_v3 = vcombine.low %v2258_v63, %v2260_v1  ;;  %v2328_v4 = vcombine.low %v2299_v0, %v2301_v2  ;;  %v2262_v5 = vpop.f32.mrb[10].mxu1  ;;  %v2303_v7 = vpop.f32.mrb[14].mxu0 }
 0x501   :  { %v2263_v8 = vpop.f32.mrb[11].mxu1  ;;  %v2304_v9 = vpop.f32.mrb[15].mxu0 }
 0x502   :  { %v2349_v11 = vrot.slane %v2327_v3, %v3476_v36  ;;  %v2356_v12 = vrot.slane %v2328_v4, %v3476_v36 }
 0x504   :  { %v2358_v15 = vcombine.low %v2349_v11, %v2356_v12 }
 0x506   :  { %v2372_v18 = vrot.slane %v2358_v15, %v3476_v36 }
 0x508   :  { %v2373_v22 = vcombine.low %v2365_v17, %v2372_v18 }
 0x50a   :  { %v2375_v23 = vadd.f32 %v2373_v22, %v2316_v21 }
 0x50c   :  { %2404 = vst [vmem:[#allocation15] sm:$0xff] %v2375_v23 }
 0x50d   :  { %3289 = shalt.err (!%p3286_p8)
}
 0x50e   :  { %s3290_s12 = scalar_lea.hbm %s3582_s8, 128 }
 0x50f   :  { %p3291_p9 = scmp.ne.s32.totalorder %s3582_s8, %s3290_s12  ;;  %p3294_p10 = scmp.lt.u32.totalorder %s3290_s12, %s3582_s8 }
 0x511   :  { %p3296_p11 = pnand %p3294_p10, %p3291_p9 }
 0x513   :  { %3299 = shalt.err (!%p3296_p11)
}
 0x514   :  { %2447 = dma.vmem_to_hbm [thread:$0]  %s2445_s10, 128, %s3582_s8, [#allocation16]  }
 0x515   :  { %s3343_s18 = smov [#allocation14]  }
 0x516   :  { %s2434_s19 = sshll.u32 %s3343_s18, 4  ;;  %s2435_s19 = int_to_ptr.vmem [resolvable:$true] %s2434_s19 }
 0x517   :  { %s3300_s20 = scalar_lea.vmem %s2435_s19, 16  ;;  %s3304_s21 = scalar_lea.vmem %s2435_s19, 32 }
 0x518   :  { %p3301_p12 = scmp.ne.s32.totalorder %s2435_s19, %s3300_s20  ;;  %p3305_p13 = scmp.lt.s32.totalorder %s2435_s19, %s2435_s19 }
 0x519   :  { %p3306_p0 = scmp.lt.s32.totalorder %s3304_s21, %s3300_s20 }
 0x51b   :  { %p3307_p1 = por %p3306_p0, %p3305_p13 }
 0x51d   :  { %p3308_p2 = pnand %p3307_p1, %p3301_p12 }
 0x539   :  { %v2396_v36 = vpop.permute.xlu0 %2395 }
 0x53a   :  { %v2401_v24 = vrot.slane %v2396_v36, %v3485_v56 }
 0x53c   :  { %2402 = vst [vmem:[#allocation14] sm:$0x1] %v2401_v24 }
 0x53d   :  { %3311 = shalt.err (!%p3308_p2)
}
 0x53e   :  { %s3312_s24 = scalar_lea.hbm %s3581_s7, 16 }
 0x53f   :  { %p3313_p3 = scmp.ne.s32.totalorder %s3581_s7, %s3312_s24  ;;  %p3316_p4 = scmp.lt.u32.totalorder %s3312_s24, %s3581_s7 }
 0x541   :  { %p3318_p5 = pnand %p3316_p4, %p3313_p3 }
 0x543   :  { %3321 = shalt.err (!%p3318_p5)
}
 0x544   :  { %2437 = dma.vmem_to_hbm [thread:$0]  %s2435_s19, 16, %s3581_s7, [#allocation13]  }
 0x545   :  { %3326 = dma.done.wait [#allocation8], 16  }
 0x546   :  { %3327 = vsyncadd [#allocation8], 4294967280 }
 0x547   :  { %3328 = dma.done.wait [#allocation13], 32  }
 0x548   :  { %3329 = vsyncadd [#allocation13], 4294967264 }
 0x549   :  { %3330 = dma.done.wait [#allocation16], 128  }
 0x54a   :  { %3331 = vsyncadd [#allocation16], 4294967168 }
 0x54b   :  { %2460 = vsyncpa [#allocation7], 1 }
 0x54c   :  { %2461 = vsyncpa [#allocation10], 1 }
 0x54d   :  { %2462 = vsyncpa [#allocation8], 1 }
 0x54e   :  { %2463 = vsyncpa [#allocation13], 1 }
 0x54f   :  { %2464 = vsyncpa [#allocation16], 1 }

</bundles_post_ra>
